<compile_context>
chip_gen: v7x
topology: tpu7x:2x2x1
jax: 0.10.0
libtpu: 0.0.40
codegen_flags: <defaults>
</compile_context>

<pallas_src>
import math
from functools import partial

import jax
import jax.numpy as jnp
from jax.experimental import pallas as pl
from jax.experimental.pallas import tpu as pltpu


# ----------------------------------------------------------------------------
# Kernel bodies.  Grid = (nlayer,), "arbitrary" (scratch carried across steps).
# Everything except W_l / b_l has a constant block index and stays resident.
# ----------------------------------------------------------------------------
def _gcn_kernel_rowmajor(x_ref, fc0w_ref, fc0b_ref, adj_ref, w_ref, b_ref,
                         fc1w_ref, fc1b_ref, out_ref, h0_sc, li_sc, *, alpha):
    """Natural [N, H] layout (used when H is a multiple of 128)."""
    l = pl.program_id(0)

    @pl.when(l == 0)
    def _prologue():
        # h0 = fc0(x) (pre-ReLU == _layers[0]); layer_inner = relu(h0).
        h0 = (jnp.dot(x_ref[...], fc0w_ref[...],
                      preferred_element_type=jnp.float32) + fc0b_ref[...])
        h0_sc[...] = alpha * h0                       # residual pre-scaled by alpha
        li_sc[...] = jnp.maximum(h0, 0.0).astype(li_sc.dtype)

    # GCNII layer (non-variant): theta*support + (1-theta)*support == support,
    # so theta/lamda are dead.  (1-alpha) is folded into W_l on the host:
    #   out = adj @ (layer_inner @ ((1-alpha) W_l)) + alpha*h0 + b_l ; ReLU.
    xw = jnp.dot(li_sc[...], w_ref[0], preferred_element_type=jnp.float32)
    hi = jnp.dot(adj_ref[...], xw.astype(adj_ref.dtype),
                 preferred_element_type=jnp.float32)
    out = hi + h0_sc[...] + b_ref[0]
    li_sc[...] = jnp.maximum(out, 0.0).astype(li_sc.dtype)

    @pl.when(l == pl.num_programs(0) - 1)
    def _epilogue():
        # fc1 into a lane-dense (128-padded) slab; sliced in the wrapper.
        out_ref[...] = (jnp.dot(li_sc[...], fc1w_ref[...],
                                preferred_element_type=jnp.float32)
                        + fc1b_ref[...])


def _gcn_kernel_transposed(xt_ref, fc0wt_ref, fc0bt_ref, adjt_ref, wt_ref,
                           bt_ref, fc1wt_ref, fc1bt_ref, outt_ref,
                           h0_sc, li_sc, *, alpha):
    """Transposed [H, N] layout: N (multiple of 128) is the lane axis, so the
    dominant xw^T @ adj^T matmul and the epilogue are lane-dense when H < 128.
    All operands arrive pre-transposed from the wrapper (adj^T, W^T, b^T)."""
    l = pl.program_id(0)

    @pl.when(l == 0)
    def _prologue():
        # h0^T = W0^T @ x^T + b0^T
        h0t = (jnp.dot(fc0wt_ref[...], xt_ref[...],
                       preferred_element_type=jnp.float32) + fc0bt_ref[...])
        h0_sc[...] = alpha * h0t
        li_sc[...] = jnp.maximum(h0t, 0.0).astype(li_sc.dtype)

    # xw^T = ((1-alpha) W_l)^T @ li^T ;  hi^T = xw^T @ adj^T
    xwt = jnp.dot(wt_ref[0], li_sc[...], preferred_element_type=jnp.float32)
    hit = jnp.dot(xwt.astype(adjt_ref.dtype), adjt_ref[...],
                  preferred_element_type=jnp.float32)
    outt = hit + h0_sc[...] + bt_ref[0]
    li_sc[...] = jnp.maximum(outt, 0.0).astype(li_sc.dtype)

    @pl.when(l == pl.num_programs(0) - 1)
    def _epilogue():
        # output^T = W1^T @ li^T + b1^T  (padded to NP rows; sliced + T in wrapper)
        outt_ref[...] = (jnp.dot(fc1wt_ref[...], li_sc[...],
                                 preferred_element_type=jnp.float32)
                         + fc1bt_ref[...])


# ----------------------------------------------------------------------------
# VMEM budget derived from the actual buffers and the device's capacity.
# ----------------------------------------------------------------------------
def _vmem_budget_bytes(required_bytes):
    cap = 64 * 1024 * 1024                       # safe on every TPU generation
    try:
        cap = int(pltpu.get_tpu_info().vmem_capacity_bytes * 3 // 4)
    except Exception:
        pass                                     # keep the conservative default
    want = int(required_bytes * 5 // 4) + (8 << 20)   # headroom for Mosaic scratch
    return int(max(32 << 20, min(want, cap)))


# ----------------------------------------------------------------------------
# Wrapper: one pallas_call for the whole forward.
# ----------------------------------------------------------------------------
def gcn_forward(params, x, adj, *, alpha, lamda, matmul_dtype=jnp.bfloat16):
    """Full GCN forward in one pallas_call.  x:[N,nfeat], adj:[N,N] (dense)."""
    # lamda / theta intentionally unused: for the non-variant GCNIILayer,
    # theta*support + (1-theta)*support == support.
    del lamda

    N, nfeat = x.shape
    fc0_w, fc0_b = params["fc0"]
    fc1_w, fc1_b = params["fc1"]
    conv_w = params["conv_w"]          # [nlayer, H, H]
    conv_b = params["conv_b"]          # [nlayer, 1, H]
    nlayer, H, _ = conv_w.shape
    nclass = fc1_w.shape[1]
    assert nlayer >= 1, "fused kernel expects at least one GCNII layer"

    mm = jnp.dtype(matmul_dtype)       # MXU feed dtype; accumulation stays f32
    msize = mm.itemsize
    f32 = jnp.float32
    alpha = float(alpha)

    # Lane-dense padded classifier width (unmasked vst on the final store).
    NP = max(128, ((nclass + 127) // 128) * 128)

    # Fold (1 - alpha) into the per-layer weights (alpha goes into h0 scratch).
    conv_w_s = (1.0 - alpha) * conv_w

    # Transposed [H, N] layout when H is not a multiple of 128 (lane density).
    transposed = (H % 128) != 0

    if transposed:
        kernel = partial(_gcn_kernel_transposed, alpha=alpha)
        inputs = (
            x.T.astype(mm),                                        # x^T   [F, N]
            fc0_w.T.astype(mm),                                    # W0^T  [H, F]
            fc0_b.T.astype(f32),                                   # b0^T  [H, 1]
            adj.T.astype(mm),                                      # adj^T [N, N]
            jnp.swapaxes(conv_w_s, 1, 2).astype(mm),               # W_l^T [L, H, H]
            jnp.swapaxes(conv_b, 1, 2).astype(f32),                # b_l^T [L, H, 1]
            jnp.zeros((NP, H), mm).at[:nclass].set(fc1_w.T.astype(mm)),
            jnp.zeros((NP, 1), f32).at[:nclass].set(fc1_b.T.astype(f32)),
        )
        blocks = (
            ((nfeat, N), True), ((H, nfeat), True), ((H, 1), True),
            ((N, N), True),
            ((1, H, H), False), ((1, H, 1), False),
            ((NP, H), True), ((NP, 1), True),
        )
        out_shape = jax.ShapeDtypeStruct((NP, N), f32)
        out_block = (NP, N)
        h0_shape, li_shape = (H, N), (H, N)
    else:
        kernel = partial(_gcn_kernel_rowmajor, alpha=alpha)
        inputs = (
            x.astype(mm),                                          # x     [N, F]
            fc0_w.astype(mm),                                      # W0    [F, H]
            fc0_b.astype(f32),                                     # b0    [1, H]
            adj.astype(mm),                                        # adj   [N, N]
            conv_w_s.astype(mm),                                   # W_l   [L, H, H]
            conv_b.astype(f32),                                    # b_l   [L, 1, H]
            jnp.zeros((H, NP), mm).at[:, :nclass].set(fc1_w.astype(mm)),
            jnp.zeros((1, NP), f32).at[:, :nclass].set(fc1_b.astype(f32)),
        )
        blocks = (
            ((N, nfeat), True), ((nfeat, H), True), ((1, H), True),
            ((N, N), True),
            ((1, H, H), False), ((1, 1, H), False),
            ((H, NP), True), ((1, NP), True),
        )
        out_shape = jax.ShapeDtypeStruct((N, NP), f32)
        out_block = (N, NP)
        h0_shape, li_shape = (N, H), (N, H)

    scratch = [pltpu.VMEM(h0_shape, f32),    # alpha * h0 (f32, resident)
               pltpu.VMEM(li_shape, mm)]     # layer_inner (matmul dtype)

    flops = 2 * N * (nfeat * H + nlayer * (H * H + N * H) + H * NP)
    bytes_accessed = (msize * (N * nfeat + nfeat * H + N * N
                               + nlayer * H * H + H * NP)
                      + 4 * (H + nlayer * H + NP + N * NP))

    def _imap(ndim, per_layer):
        if per_layer:
            return lambda l: (l,) + (0,) * (ndim - 1)
        return lambda l: (0,) * ndim

    def _build(single_buffer_resident):
        in_specs = []
        vmem_req = 0
        for arr, (blk, resident) in zip(inputs, blocks):
            imap = _imap(len(blk), per_layer=not resident)
            if resident and single_buffer_resident:
                # Constant block index -> a second buffer is pure VMEM waste
                # (critical for the N x N adjacency on v7x's 64 MiB VMEM).
                spec = pl.BlockSpec(blk, imap, pipeline_mode=pl.Buffered(1))
                nbuf = 1
            else:
                spec = pl.BlockSpec(blk, imap)   # W_l / b_l stay double-buffered
                nbuf = 2
            in_specs.append(spec)
            vmem_req += math.prod(blk) * jnp.dtype(arr.dtype).itemsize * nbuf

        vmem_req += 2 * math.prod(out_block) * 4          # output buffers
        vmem_req += math.prod(h0_shape) * 4               # h0 scratch
        vmem_req += math.prod(li_shape) * msize           # layer_inner scratch

        return pl.pallas_call(
            kernel,
            out_shape=out_shape,
            grid_spec=pltpu.PrefetchScalarGridSpec(
                num_scalar_prefetch=0,
                grid=(nlayer,),
                in_specs=in_specs,
                out_specs=pl.BlockSpec(out_block, lambda l: (0,) * len(out_block)),
                scratch_shapes=scratch),
            compiler_params=pltpu.CompilerParams(
                dimension_semantics=("arbitrary",),
                vmem_limit_bytes=_vmem_budget_bytes(vmem_req)),
            cost_estimate=pl.CostEstimate(
                flops=flops, transcendentals=0, bytes_accessed=bytes_accessed),
        )

    try:
        out_pad = jax.block_until_ready(_build(True)(*inputs))
    except Exception:
        # pipeline_mode=pl.Buffered(1) not supported by this jax/Mosaic build:
        # fall back to the default double-buffered resident blocks.
        out_pad = _build(False)(*inputs)

    if transposed:
        return out_pad[:nclass, :].T
    return out_pad[:, :nclass]


# ----------------------------------------------------------------------------
# Pure-JAX reference (original formula, theta included) for verification.
# ----------------------------------------------------------------------------
def gcn_forward_ref(params, x, adj, *, alpha, lamda):
    hp = jax.lax.Precision.HIGHEST
    fc0_w, fc0_b = params["fc0"]
    fc1_w, fc1_b = params["fc1"]
    h0 = jnp.dot(x, fc0_w, precision=hp) + fc0_b
    li = jnp.maximum(h0, 0.0)
    for i in range(params["conv_w"].shape[0]):
        theta = math.log(lamda / (i + 1) + 1.0)
        xw = jnp.dot(li, params["conv_w"][i], precision=hp)
        hi = jnp.dot(adj, xw, precision=hp)
        support = (1.0 - alpha) * hi + alpha * h0
        r = support
        out = theta * support + (1.0 - theta) * r + params["conv_b"][i]
        li = jnp.maximum(out, 0.0)
    return jnp.dot(li, fc1_w, precision=hp) + fc1_b


# ----------------------------------------------------------------------------
# Parameter construction (deterministic, synthetic)
# ----------------------------------------------------------------------------
def init_params(key, nfeat, nhid, nclass, nlayer):
    k_fc0, k_fc1, k_conv = jax.random.split(key, 3)

    def torch_linear_init(k, fan_in, fan_out):
        # PyTorch nn.Linear default: U(-1/sqrt(fan_in), 1/sqrt(fan_in)).
        # Weight stored as [in, out] (kernel computes x @ W).
        bound = 1.0 / math.sqrt(fan_in)
        kw, kb = jax.random.split(k)
        w = jax.random.uniform(kw, (fan_in, fan_out), jnp.float32, -bound, bound)
        b = jax.random.uniform(kb, (1, fan_out), jnp.float32, -bound, bound)
        return w, b

    fc0_w, fc0_b = torch_linear_init(k_fc0, nfeat, nhid)
    fc1_w, fc1_b = torch_linear_init(k_fc1, nhid, nclass)

    # GCNIILayer.weight: xavier_normal_ gain=0.02; bias zeros, shape [1, nhid].
    std = 0.02 * math.sqrt(2.0 / (nhid + nhid))
    conv_w = std * jax.random.normal(k_conv, (nlayer, nhid, nhid), jnp.float32)
    conv_b = jnp.zeros((nlayer, 1, nhid), jnp.float32)

    return {"fc0": (fc0_w, fc0_b), "fc1": (fc1_w, fc1_b),
            "conv_w": conv_w, "conv_b": conv_b}


# ----------------------------------------------------------------------------
def _run_case(key, *, N, nfeat, nhid, nclass, nlayer, alpha, lamda,
              matmul_dtype, tol):
    k_x, k_adj, k_p = jax.random.split(key, 3)

    x = jax.random.normal(k_x, (N, nfeat), jnp.float32)

    # Dense symmetric normalized adjacency A_hat = D^-1/2 (A+I) D^-1/2.
    a = (jax.random.uniform(k_adj, (N, N)) < 0.05).astype(jnp.float32)
    a = jnp.maximum(a, a.T) + jnp.eye(N, dtype=jnp.float32)
    deg = jnp.sum(a, axis=1)
    d_inv_sqrt = 1.0 / jnp.sqrt(deg)
    adj = a * d_inv_sqrt[:, None] * d_inv_sqrt[None, :]

    params = init_params(k_p, nfeat, nhid, nclass, nlayer)

    out = gcn_forward(params, x, adj, alpha=alpha, lamda=lamda,
                      matmul_dtype=matmul_dtype)
    out = jax.block_until_ready(out)
    assert out.shape == (N, nclass) and out.dtype == jnp.float32

    ref = jax.block_until_ready(
        gcn_forward_ref(params, x, adj, alpha=alpha, lamda=lamda))
    max_err = float(jnp.max(jnp.abs(out - ref)))
    assert max_err < tol, f"mismatch vs reference: max abs err {max_err}"
    return max_err


if __name__ == "__main__":
    key = jax.random.PRNGKey(0)
    k1, k2, k3 = jax.random.split(key, 3)

    # Case 1: H=64 (< 128) -> transposed [H, N] layout, bf16 MXU feed (default).
    _run_case(k1, N=256, nfeat=64, nhid=64, nclass=16, nlayer=2,
              alpha=0.1, lamda=0.5, matmul_dtype=jnp.bfloat16, tol=3e-2)

    # Case 2: H=128 -> natural [N, H] layout, bf16 MXU feed.
    _run_case(k2, N=256, nfeat=64, nhid=128, nclass=10, nlayer=3,
              alpha=0.2, lamda=1.0, matmul_dtype=jnp.bfloat16, tol=3e-2)

    # Case 3: f32 MXU feed sanity check (tighter tolerance).
    _run_case(k3, N=256, nfeat=64, nhid=64, nclass=16, nlayer=2,
              alpha=0.1, lamda=0.5, matmul_dtype=jnp.float32, tol=1e-2)

    print("KERNEL_OK")
</pallas_src>

<mosaic_0001>
module attributes {stable_mosaic.version = 11 : i64} {
  func.func @_gcn_kernel_transposed(%arg0: i32, %arg1: memref<64x256xbf16, #tpu.memory_space<vmem>>, %arg2: memref<64x64xbf16, #tpu.memory_space<vmem>>, %arg3: memref<64x1xf32, #tpu.memory_space<vmem>>, %arg4: memref<256x256xbf16, #tpu.memory_space<vmem>>, %arg5: memref<1x64x64xbf16, #tpu.memory_space<vmem>>, %arg6: memref<1x64x1xf32, #tpu.memory_space<vmem>>, %arg7: memref<128x64xbf16, #tpu.memory_space<vmem>>, %arg8: memref<128x1xf32, #tpu.memory_space<vmem>>, %arg9: memref<128x256xf32, #tpu.memory_space<vmem>>, %arg10: memref<64x256xf32, #tpu.memory_space<vmem>>, %arg11: memref<64x256xbf16, #tpu.memory_space<vmem>>) attributes {dimension_semantics = [#tpu.dimension_semantics<arbitrary>], iteration_bounds = array<i64: 2>, scalar_prefetch = 0 : i64, scratch_operands = 2 : i64, tpu.core_type = #tpu.core_type<tc>, window_params = [{pipeline_mode = #tpu.pipeline_mode<synchronous>, transform_indices = @transform_0, window_bounds = array<i64: 64, 256>}, {pipeline_mode = #tpu.pipeline_mode<synchronous>, transform_indices = @transform_1, window_bounds = array<i64: 64, 64>}, {pipeline_mode = #tpu.pipeline_mode<synchronous>, transform_indices = @transform_2, window_bounds = array<i64: 64, 1>}, {pipeline_mode = #tpu.pipeline_mode<synchronous>, transform_indices = @transform_3, window_bounds = array<i64: 256, 256>}, {transform_indices = @transform_4, window_bounds = array<i64: 1, 64, 64>}, {transform_indices = @transform_5, window_bounds = array<i64: 1, 64, 1>}, {pipeline_mode = #tpu.pipeline_mode<synchronous>, transform_indices = @transform_6, window_bounds = array<i64: 128, 64>}, {pipeline_mode = #tpu.pipeline_mode<synchronous>, transform_indices = @transform_7, window_bounds = array<i64: 128, 1>}, {pipeline_mode = #tpu.pipeline_mode<synchronous>, transform_indices = @transform_8, window_bounds = array<i64: 128, 256>}]} {
    %c0_i32 = arith.constant 0 : i32
    %0 = arith.cmpi eq, %arg0, %c0_i32 : i32
    %1 = arith.extui %0 : i1 to i32
    %c0_i32_0 = arith.constant 0 : i32
    %2 = arith.cmpi ne, %1, %c0_i32_0 : i32
    scf.if %2 {
      %c0_17 = arith.constant 0 : index
      %c0_18 = arith.constant 0 : index
      %23 = vector.load %arg2[%c0_17, %c0_18] : memref<64x64xbf16, #tpu.memory_space<vmem>>, vector<64x64xbf16>
      %c0_19 = arith.constant 0 : index
      %c0_20 = arith.constant 0 : index
      %24 = vector.load %arg1[%c0_19, %c0_20] : memref<64x256xbf16, #tpu.memory_space<vmem>>, vector<64x256xbf16>
      %cst_21 = arith.constant dense<0.000000e+00> : vector<64x256xf32>
      %25 = tpu.matmul %23, %24, %cst_21 {dimension_numbers = #tpu.dot_dimension_numbers<[1], [0], [0], [1], [0, 0, 1, 1], [], []>} : vector<64x64xbf16>, vector<64x256xbf16>, vector<64x256xf32> -> vector<64x256xf32>
      %c0_22 = arith.constant 0 : index
      %c0_23 = arith.constant 0 : index
      %26 = vector.load %arg3[%c0_22, %c0_23] : memref<64x1xf32, #tpu.memory_space<vmem>>, vector<64x1xf32>
      %27 = vector.broadcast %26 : vector<64x1xf32> to vector<64x256xf32>
      %28 = arith.addf %25, %27 : vector<64x256xf32>
      %cst_24 = arith.constant 1.000000e-01 : f32
      %29 = vector.broadcast %cst_24 : f32 to vector<64x256xf32>
      %30 = arith.mulf %29, %28 : vector<64x256xf32>
      %c0_25 = arith.constant 0 : index
      %c0_26 = arith.constant 0 : index
      %31 = vector.load %arg10[%c0_25, %c0_26] : memref<64x256xf32, #tpu.memory_space<vmem>>, vector<64x256xf32>
      tpu.vector_store %arg10[%c0_25, %c0_26], %30 {strides = array<i32>} : memref<64x256xf32, #tpu.memory_space<vmem>>, vector<64x256xf32>,
      %cst_27 = arith.constant 0.000000e+00 : f32
      %32 = vector.broadcast %cst_27 : f32 to vector<64x256xf32>
      %33 = arith.maximumf %28, %32 : vector<64x256xf32>
      %34 = arith.truncf %33 : vector<64x256xf32> to vector<64x256xbf16>
      %c0_28 = arith.constant 0 : index
      %c0_29 = arith.constant 0 : index
      %35 = vector.load %arg11[%c0_28, %c0_29] : memref<64x256xbf16, #tpu.memory_space<vmem>>, vector<64x256xbf16>
      tpu.vector_store %arg11[%c0_28, %c0_29], %34 {strides = array<i32>} : memref<64x256xbf16, #tpu.memory_space<vmem>>, vector<64x256xbf16>,
    } else {
    }
    %c0 = arith.constant 0 : index
    %c0_1 = arith.constant 0 : index
    %c0_2 = arith.constant 0 : index
    %3 = vector.load %arg5[%c0, %c0_1, %c0_2] : memref<1x64x64xbf16, #tpu.memory_space<vmem>>, vector<1x64x64xbf16>
    %4 = vector.shape_cast %3 : vector<1x64x64xbf16> to vector<64x64xbf16>
    %c0_3 = arith.constant 0 : index
    %c0_4 = arith.constant 0 : index
    %5 = vector.load %arg11[%c0_3, %c0_4] : memref<64x256xbf16, #tpu.memory_space<vmem>>, vector<64x256xbf16>
    %cst = arith.constant dense<0.000000e+00> : vector<64x256xf32>
    %6 = tpu.matmul %4, %5, %cst {dimension_numbers = #tpu.dot_dimension_numbers<[1], [0], [0], [1], [0, 0, 1, 1], [], []>} : vector<64x64xbf16>, vector<64x256xbf16>, vector<64x256xf32> -> vector<64x256xf32>
    %7 = arith.truncf %6 : vector<64x256xf32> to vector<64x256xbf16>
    %c0_5 = arith.constant 0 : index
    %c0_6 = arith.constant 0 : index
    %8 = vector.load %arg4[%c0_5, %c0_6] : memref<256x256xbf16, #tpu.memory_space<vmem>>, vector<256x256xbf16>
    %cst_7 = arith.constant dense<0.000000e+00> : vector<64x256xf32>
    %9 = tpu.matmul %7, %8, %cst_7 {dimension_numbers = #tpu.dot_dimension_numbers<[1], [0], [0], [1], [0, 0, 1, 1], [], []>} : vector<64x256xbf16>, vector<256x256xbf16>, vector<64x256xf32> -> vector<64x256xf32>
    %c0_8 = arith.constant 0 : index
    %c0_9 = arith.constant 0 : index
    %10 = vector.load %arg10[%c0_8, %c0_9] : memref<64x256xf32, #tpu.memory_space<vmem>>, vector<64x256xf32>
    %11 = arith.addf %9, %10 : vector<64x256xf32>
    %c0_10 = arith.constant 0 : index
    %c0_11 = arith.constant 0 : index
    %c0_12 = arith.constant 0 : index
    %12 = vector.load %arg6[%c0_10, %c0_11, %c0_12] : memref<1x64x1xf32, #tpu.memory_space<vmem>>, vector<1x64x1xf32>
    %13 = vector.shape_cast %12 : vector<1x64x1xf32> to vector<64x1xf32>
    %14 = vector.broadcast %13 : vector<64x1xf32> to vector<64x256xf32>
    %15 = arith.addf %11, %14 : vector<64x256xf32>
    %cst_13 = arith.constant 0.000000e+00 : f32
    %16 = vector.broadcast %cst_13 : f32 to vector<64x256xf32>
    %17 = arith.maximumf %15, %16 : vector<64x256xf32>
    %18 = arith.truncf %17 : vector<64x256xf32> to vector<64x256xbf16>
    %c0_14 = arith.constant 0 : index
    %c0_15 = arith.constant 0 : index
    %19 = vector.load %arg11[%c0_14, %c0_15] : memref<64x256xbf16, #tpu.memory_space<vmem>>, vector<64x256xbf16>
    tpu.vector_store %arg11[%c0_14, %c0_15], %18 {strides = array<i32>} : memref<64x256xbf16, #tpu.memory_space<vmem>>, vector<64x256xbf16>,
    %c1_i32 = arith.constant 1 : i32
    %20 = arith.cmpi eq, %arg0, %c1_i32 : i32
    %21 = arith.extui %20 : i1 to i32
    %c0_i32_16 = arith.constant 0 : i32
    %22 = arith.cmpi ne, %21, %c0_i32_16 : i32
    scf.if %22 {
      %c0_17 = arith.constant 0 : index
      %c0_18 = arith.constant 0 : index
      %23 = vector.load %arg7[%c0_17, %c0_18] : memref<128x64xbf16, #tpu.memory_space<vmem>>, vector<128x64xbf16>
      %c0_19 = arith.constant 0 : index
      %c0_20 = arith.constant 0 : index
      %24 = vector.load %arg11[%c0_19, %c0_20] : memref<64x256xbf16, #tpu.memory_space<vmem>>, vector<64x256xbf16>
      %cst_21 = arith.constant dense<0.000000e+00> : vector<128x256xf32>
      %25 = tpu.matmul %23, %24, %cst_21 {dimension_numbers = #tpu.dot_dimension_numbers<[1], [0], [0], [1], [0, 0, 1, 1], [], []>} : vector<128x64xbf16>, vector<64x256xbf16>, vector<128x256xf32> -> vector<128x256xf32>
      %c0_22 = arith.constant 0 : index
      %c0_23 = arith.constant 0 : index
      %26 = vector.load %arg8[%c0_22, %c0_23] : memref<128x1xf32, #tpu.memory_space<vmem>>, vector<128x1xf32>
      %27 = vector.broadcast %26 : vector<128x1xf32> to vector<128x256xf32>
      %28 = arith.addf %25, %27 : vector<128x256xf32>
      %c0_24 = arith.constant 0 : index
      %c0_25 = arith.constant 0 : index
      %29 = vector.load %arg9[%c0_24, %c0_25] : memref<128x256xf32, #tpu.memory_space<vmem>>, vector<128x256xf32>
      tpu.vector_store %arg9[%c0_24, %c0_25], %28 {strides = array<i32>} : memref<128x256xf32, #tpu.memory_space<vmem>>, vector<128x256xf32>,
    } else {
    }
    return
  }
  func.func @transform_0(%arg0: i32) -> (i32, i32) {
    %c0_i32 = arith.constant 0 : i32
    %c0_i32_0 = arith.constant 0 : i32
    %c0_i32_1 = arith.constant 0 : i32
    return %c0_i32, %c0_i32_0 : i32, i32
  }
  func.func @transform_1(%arg0: i32) -> (i32, i32) {
    %c0_i32 = arith.constant 0 : i32
    %c0_i32_0 = arith.constant 0 : i32
    %c0_i32_1 = arith.constant 0 : i32
    return %c0_i32, %c0_i32_0 : i32, i32
  }
  func.func @transform_2(%arg0: i32) -> (i32, i32) {
    %c0_i32 = arith.constant 0 : i32
    %c0_i32_0 = arith.constant 0 : i32
    %c0_i32_1 = arith.constant 0 : i32
    return %c0_i32, %c0_i32_0 : i32, i32
  }
  func.func @transform_3(%arg0: i32) -> (i32, i32) {
    %c0_i32 = arith.constant 0 : i32
    %c0_i32_0 = arith.constant 0 : i32
    %c0_i32_1 = arith.constant 0 : i32
    return %c0_i32, %c0_i32_0 : i32, i32
  }
  func.func @transform_4(%arg0: i32) -> (i32, i32, i32) {
    %c0_i32 = arith.constant 0 : i32
    %c0_i32_0 = arith.constant 0 : i32
    %c0_i32_1 = arith.constant 0 : i32
    return %arg0, %c0_i32, %c0_i32_0 : i32, i32, i32
  }
  func.func @transform_5(%arg0: i32) -> (i32, i32, i32) {
    %c0_i32 = arith.constant 0 : i32
    %c0_i32_0 = arith.constant 0 : i32
    %c0_i32_1 = arith.constant 0 : i32
    return %arg0, %c0_i32, %c0_i32_0 : i32, i32, i32
  }
  func.func @transform_6(%arg0: i32) -> (i32, i32) {
    %c0_i32 = arith.constant 0 : i32
    %c0_i32_0 = arith.constant 0 : i32
    %c0_i32_1 = arith.constant 0 : i32
    return %c0_i32, %c0_i32_0 : i32, i32
  }
  func.func @transform_7(%arg0: i32) -> (i32, i32) {
    %c0_i32 = arith.constant 0 : i32
    %c0_i32_0 = arith.constant 0 : i32
    %c0_i32_1 = arith.constant 0 : i32
    return %c0_i32, %c0_i32_0 : i32, i32
  }
  func.func @transform_8(%arg0: i32) -> (i32, i32) {
    %c0_i32 = arith.constant 0 : i32
    %c0_i32_0 = arith.constant 0 : i32
    %c0_i32_1 = arith.constant 0 : i32
    return %c0_i32, %c0_i32_0 : i32, i32
  }
}

module attributes {stable_mosaic.version = 11 : i64} {
  func.func @_gcn_kernel_transposed(%arg0: i32, %arg1: memref<64x256xbf16, #tpu.memory_space<vmem>>, %arg2: memref<64x64xbf16, #tpu.memory_space<vmem>>, %arg3: memref<64x1xf32, #tpu.memory_space<vmem>>, %arg4: memref<256x256xbf16, #tpu.memory_space<vmem>>, %arg5: memref<1x64x64xbf16, #tpu.memory_space<vmem>>, %arg6: memref<1x64x1xf32, #tpu.memory_space<vmem>>, %arg7: memref<128x64xbf16, #tpu.memory_space<vmem>>, %arg8: memref<128x1xf32, #tpu.memory_space<vmem>>, %arg9: memref<128x256xf32, #tpu.memory_space<vmem>>, %arg10: memref<64x256xf32, #tpu.memory_space<vmem>>, %arg11: memref<64x256xbf16, #tpu.memory_space<vmem>>) attributes {dimension_semantics = [#tpu.dimension_semantics<arbitrary>], iteration_bounds = array<i64: 2>, scalar_prefetch = 0 : i64, scratch_operands = 2 : i64, tpu.core_type = #tpu.core_type<tc>, window_params = [{pipeline_mode = #tpu.pipeline_mode<synchronous>, transform_indices = @transform_0, window_bounds = array<i64: 64, 256>}, {pipeline_mode = #tpu.pipeline_mode<synchronous>, transform_indices = @transform_1, window_bounds = array<i64: 64, 64>}, {pipeline_mode = #tpu.pipeline_mode<synchronous>, transform_indices = @transform_2, window_bounds = array<i64: 64, 1>}, {pipeline_mode = #tpu.pipeline_mode<synchronous>, transform_indices = @transform_3, window_bounds = array<i64: 256, 256>}, {transform_indices = @transform_4, window_bounds = array<i64: 1, 64, 64>}, {transform_indices = @transform_5, window_bounds = array<i64: 1, 64, 1>}, {pipeline_mode = #tpu.pipeline_mode<synchronous>, transform_indices = @transform_6, window_bounds = array<i64: 128, 64>}, {pipeline_mode = #tpu.pipeline_mode<synchronous>, transform_indices = @transform_7, window_bounds = array<i64: 128, 1>}, {pipeline_mode = #tpu.pipeline_mode<synchronous>, transform_indices = @transform_8, window_bounds = array<i64: 128, 256>}]} {
    %c0_i32 = arith.constant 0 : i32
    %0 = arith.cmpi eq, %arg0, %c0_i32 : i32
    %1 = arith.extui %0 : i1 to i32
    %c0_i32_0 = arith.constant 0 : i32
    %2 = arith.cmpi ne, %1, %c0_i32_0 : i32
    scf.if %2 {
      %c0_17 = arith.constant 0 : index
      %c0_18 = arith.constant 0 : index
      %23 = vector.load %arg2[%c0_17, %c0_18] : memref<64x64xbf16, #tpu.memory_space<vmem>>, vector<64x64xbf16>
      %c0_19 = arith.constant 0 : index
      %c0_20 = arith.constant 0 : index
      %24 = vector.load %arg1[%c0_19, %c0_20] : memref<64x256xbf16, #tpu.memory_space<vmem>>, vector<64x256xbf16>
      %cst_21 = arith.constant dense<0.000000e+00> : vector<64x256xf32>
      %25 = tpu.matmul %23, %24, %cst_21 {dimension_numbers = #tpu.dot_dimension_numbers<[1], [0], [0], [1], [0, 0, 1, 1], [], []>} : vector<64x64xbf16>, vector<64x256xbf16>, vector<64x256xf32> -> vector<64x256xf32>
      %c0_22 = arith.constant 0 : index
      %c0_23 = arith.constant 0 : index
      %26 = vector.load %arg3[%c0_22, %c0_23] : memref<64x1xf32, #tpu.memory_space<vmem>>, vector<64x1xf32>
      %27 = vector.broadcast %26 : vector<64x1xf32> to vector<64x256xf32>
      %28 = arith.addf %25, %27 : vector<64x256xf32>
      %cst_24 = arith.constant 1.000000e-01 : f32
      %29 = vector.broadcast %cst_24 : f32 to vector<64x256xf32>
      %30 = arith.mulf %29, %28 : vector<64x256xf32>
      %c0_25 = arith.constant 0 : index
      %c0_26 = arith.constant 0 : index
      %31 = vector.load %arg10[%c0_25, %c0_26] : memref<64x256xf32, #tpu.memory_space<vmem>>, vector<64x256xf32>
      tpu.vector_store %arg10[%c0_25, %c0_26], %30 {strides = array<i32>} : memref<64x256xf32, #tpu.memory_space<vmem>>, vector<64x256xf32>,
      %cst_27 = arith.constant 0.000000e+00 : f32
      %32 = vector.broadcast %cst_27 : f32 to vector<64x256xf32>
      %33 = arith.maximumf %28, %32 : vector<64x256xf32>
      %34 = arith.truncf %33 : vector<64x256xf32> to vector<64x256xbf16>
      %c0_28 = arith.constant 0 : index
      %c0_29 = arith.constant 0 : index
      %35 = vector.load %arg11[%c0_28, %c0_29] : memref<64x256xbf16, #tpu.memory_space<vmem>>, vector<64x256xbf16>
      tpu.vector_store %arg11[%c0_28, %c0_29], %34 {strides = array<i32>} : memref<64x256xbf16, #tpu.memory_space<vmem>>, vector<64x256xbf16>,
    } else {
    }
    %c0 = arith.constant 0 : index
    %c0_1 = arith.constant 0 : index
    %c0_2 = arith.constant 0 : index
    %3 = vector.load %arg5[%c0, %c0_1, %c0_2] : memref<1x64x64xbf16, #tpu.memory_space<vmem>>, vector<1x64x64xbf16>
    %4 = vector.shape_cast %3 : vector<1x64x64xbf16> to vector<64x64xbf16>
    %c0_3 = arith.constant 0 : index
    %c0_4 = arith.constant 0 : index
    %5 = vector.load %arg11[%c0_3, %c0_4] : memref<64x256xbf16, #tpu.memory_space<vmem>>, vector<64x256xbf16>
    %cst = arith.constant dense<0.000000e+00> : vector<64x256xf32>
    %6 = tpu.matmul %4, %5, %cst {dimension_numbers = #tpu.dot_dimension_numbers<[1], [0], [0], [1], [0, 0, 1, 1], [], []>} : vector<64x64xbf16>, vector<64x256xbf16>, vector<64x256xf32> -> vector<64x256xf32>
    %7 = arith.truncf %6 : vector<64x256xf32> to vector<64x256xbf16>
    %c0_5 = arith.constant 0 : index
    %c0_6 = arith.constant 0 : index
    %8 = vector.load %arg4[%c0_5, %c0_6] : memref<256x256xbf16, #tpu.memory_space<vmem>>, vector<256x256xbf16>
    %cst_7 = arith.constant dense<0.000000e+00> : vector<64x256xf32>
    %9 = tpu.matmul %7, %8, %cst_7 {dimension_numbers = #tpu.dot_dimension_numbers<[1], [0], [0], [1], [0, 0, 1, 1], [], []>} : vector<64x256xbf16>, vector<256x256xbf16>, vector<64x256xf32> -> vector<64x256xf32>
    %c0_8 = arith.constant 0 : index
    %c0_9 = arith.constant 0 : index
    %10 = vector.load %arg10[%c0_8, %c0_9] : memref<64x256xf32, #tpu.memory_space<vmem>>, vector<64x256xf32>
    %11 = arith.addf %9, %10 : vector<64x256xf32>
    %c0_10 = arith.constant 0 : index
    %c0_11 = arith.constant 0 : index
    %c0_12 = arith.constant 0 : index
    %12 = vector.load %arg6[%c0_10, %c0_11, %c0_12] : memref<1x64x1xf32, #tpu.memory_space<vmem>>, vector<1x64x1xf32>
    %13 = vector.shape_cast %12 : vector<1x64x1xf32> to vector<64x1xf32>
    %14 = vector.broadcast %13 : vector<64x1xf32> to vector<64x256xf32>
    %15 = arith.addf %11, %14 : vector<64x256xf32>
    %cst_13 = arith.constant 0.000000e+00 : f32
    %16 = vector.broadcast %cst_13 : f32 to vector<64x256xf32>
    %17 = arith.maximumf %15, %16 : vector<64x256xf32>
    %18 = arith.truncf %17 : vector<64x256xf32> to vector<64x256xbf16>
    %c0_14 = arith.constant 0 : index
    %c0_15 = arith.constant 0 : index
    %19 = vector.load %arg11[%c0_14, %c0_15] : memref<64x256xbf16, #tpu.memory_space<vmem>>, vector<64x256xbf16>
    tpu.vector_store %arg11[%c0_14, %c0_15], %18 {strides = array<i32>} : memref<64x256xbf16, #tpu.memory_space<vmem>>, vector<64x256xbf16>,
    %c1_i32 = arith.constant 1 : i32
    %20 = arith.cmpi eq, %arg0, %c1_i32 : i32
    %21 = arith.extui %20 : i1 to i32
    %c0_i32_16 = arith.constant 0 : i32
    %22 = arith.cmpi ne, %21, %c0_i32_16 : i32
    scf.if %22 {
      %c0_17 = arith.constant 0 : index
      %c0_18 = arith.constant 0 : index
      %23 = vector.load %arg7[%c0_17, %c0_18] : memref<128x64xbf16, #tpu.memory_space<vmem>>, vector<128x64xbf16>
      %c0_19 = arith.constant 0 : index
      %c0_20 = arith.constant 0 : index
      %24 = vector.load %arg11[%c0_19, %c0_20] : memref<64x256xbf16, #tpu.memory_space<vmem>>, vector<64x256xbf16>
      %cst_21 = arith.constant dense<0.000000e+00> : vector<128x256xf32>
      %25 = tpu.matmul %23, %24, %cst_21 {dimension_numbers = #tpu.dot_dimension_numbers<[1], [0], [0], [1], [0, 0, 1, 1], [], []>} : vector<128x64xbf16>, vector<64x256xbf16>, vector<128x256xf32> -> vector<128x256xf32>
      %c0_22 = arith.constant 0 : index
      %c0_23 = arith.constant 0 : index
      %26 = vector.load %arg8[%c0_22, %c0_23] : memref<128x1xf32, #tpu.memory_space<vmem>>, vector<128x1xf32>
      %27 = vector.broadcast %26 : vector<128x1xf32> to vector<128x256xf32>
      %28 = arith.addf %25, %27 : vector<128x256xf32>
      %c0_24 = arith.constant 0 : index
      %c0_25 = arith.constant 0 : index
      %29 = vector.load %arg9[%c0_24, %c0_25] : memref<128x256xf32, #tpu.memory_space<vmem>>, vector<128x256xf32>
      tpu.vector_store %arg9[%c0_24, %c0_25], %28 {strides = array<i32>} : memref<128x256xf32, #tpu.memory_space<vmem>>, vector<128x256xf32>,
    } else {
    }
    return
  }
  func.func @transform_0(%arg0: i32) -> (i32, i32) {
    %c0_i32 = arith.constant 0 : i32
    %c0_i32_0 = arith.constant 0 : i32
    %c0_i32_1 = arith.constant 0 : i32
    return %c0_i32, %c0_i32_0 : i32, i32
  }
  func.func @transform_1(%arg0: i32) -> (i32, i32) {
    %c0_i32 = arith.constant 0 : i32
    %c0_i32_0 = arith.constant 0 : i32
    %c0_i32_1 = arith.constant 0 : i32
    return %c0_i32, %c0_i32_0 : i32, i32
  }
  func.func @transform_2(%arg0: i32) -> (i32, i32) {
    %c0_i32 = arith.constant 0 : i32
    %c0_i32_0 = arith.constant 0 : i32
    %c0_i32_1 = arith.constant 0 : i32
    return %c0_i32, %c0_i32_0 : i32, i32
  }
  func.func @transform_3(%arg0: i32) -> (i32, i32) {
    %c0_i32 = arith.constant 0 : i32
    %c0_i32_0 = arith.constant 0 : i32
    %c0_i32_1 = arith.constant 0 : i32
    return %c0_i32, %c0_i32_0 : i32, i32
  }
  func.func @transform_4(%arg0: i32) -> (i32, i32, i32) {
    %c0_i32 = arith.constant 0 : i32
    %c0_i32_0 = arith.constant 0 : i32
    %c0_i32_1 = arith.constant 0 : i32
    return %arg0, %c0_i32, %c0_i32_0 : i32, i32, i32
  }
  func.func @transform_5(%arg0: i32) -> (i32, i32, i32) {
    %c0_i32 = arith.constant 0 : i32
    %c0_i32_0 = arith.constant 0 : i32
    %c0_i32_1 = arith.constant 0 : i32
    return %arg0, %c0_i32, %c0_i32_0 : i32, i32, i32
  }
  func.func @transform_6(%arg0: i32) -> (i32, i32) {
    %c0_i32 = arith.constant 0 : i32
    %c0_i32_0 = arith.constant 0 : i32
    %c0_i32_1 = arith.constant 0 : i32
    return %c0_i32, %c0_i32_0 : i32, i32
  }
  func.func @transform_7(%arg0: i32) -> (i32, i32) {
    %c0_i32 = arith.constant 0 : i32
    %c0_i32_0 = arith.constant 0 : i32
    %c0_i32_1 = arith.constant 0 : i32
    return %c0_i32, %c0_i32_0 : i32, i32
  }
  func.func @transform_8(%arg0: i32) -> (i32, i32) {
    %c0_i32 = arith.constant 0 : i32
    %c0_i32_0 = arith.constant 0 : i32
    %c0_i32_1 = arith.constant 0 : i32
    return %c0_i32, %c0_i32_0 : i32, i32
  }
}

</mosaic_0001>

<bundles_post_ra>
// kernel: tpu_custom_call.1
= control target key start
LH: loop header
LB: loop body
LE: loop exit
PB: predicated region body
PF: predicated region fallthrough
CT: control target
= control target key end

     0   :  { %13 = vsyncpa [#allocation5], 0  ;;  %s2246_s0 = inlined_call_operand.vmem [shape: bf16[64,256], index: 0, kind: input, shape index: {}]   ;;  %s2247_s1 = inlined_call_operand.hbm [shape: bf16[64,64], index: 1, kind: input, shape index: {}]   ;;  %s2248_s2 = inlined_call_operand.vmem [shape: f32[64,1], index: 2, kind: input, shape index: {}]   ;;  %s2249_s3 = inlined_call_operand.vmem [shape: bf16[256,256], index: 3, kind: input, shape index: {}]   ;;  %s2250_s4 = inlined_call_operand.vmem [shape: bf16[2,64,64], index: 4, kind: input, shape index: {}]   ;;  %s2251_s5 = inlined_call_operand.vmem [shape: f32[2,64,1], index: 5, kind: input, shape index: {}]   ;;  %s2252_s6 = inlined_call_operand.vmem [shape: bf16[128,64], index: 6, kind: input, shape index: {}]   ;;  %s2253_s7 = inlined_call_operand.vmem [shape: f32[128,1], index: 7, kind: input, shape index: {}]   ;;  %s2254_s8 = inlined_call_operand.hbm [shape: f32[128,256], index: 8, kind: output, shape index: {}]  }
   0x1   :  { %14 = vsyncpa [#allocation6], 0  ;;  %s1895_s27 = smov 0  }
   0x2 LB: > { %s1901_s28 = sadd.s32 4294967295, %s1839_s27   ;;  %p1519_p0 = scmp.ge.s32.totalorder %s1839_s27, 1  ;;  %s1839_s27 = sphi %s1895_s27, %s20_s27  }
   0x3   : > { %p224_p1 = scmp.lt.s32.totalorder %s1839_s27, 3  ;;  %s1841_s29 = smov [#allocation4]  }
   0x4   : > { %s239_s30 = sshll.u32 %s1841_s29, 4  ;;  %p2255_p4 = scmp.eq.s32.totalorder %s1901_s28, 0  ;;  %s240_s30 = int_to_ptr.vmem [resolvable:$true] %s239_s30 }
   0x5   : > { %p1906_p3 = pnand %p1519_p0, %p224_p1  ;;  %s1771_s13 = scalar_lea.hbm %s2247_s1, 512 }
   0x6   : > { %p1772_p7 = scmp.ne.s32.totalorder %s2247_s1, %s1771_s13  ;;  %p1778_p11 = scmp.lt.u32.totalorder %s1771_s13, %s2247_s1 }
   0x7   : > { %s2257_s9 = scalar_select %p1906_p3, 1, 0 }
   0x8   : > { %p1664_p5 = pneg %p1906_p3 }
   0xa   : > { %p1915_p6 = pnand %p2255_p4, %p1664_p5 }
   0xc   : > { %p1773_p8 = pneg %p1915_p6 }
   0xe   : > { %p1774_p9 = pnand %p1773_p8, %p1772_p7 }
  0x10   : > { %p1775_p10 = pneg %p1774_p9 }
  0x12   : > { %p1780_p12 = pnand %p1778_p11, %p1775_p10 }
  0x14   : > { %1783 = shalt.err (!%p1780_p12)
}
  0x15   : > { %s1784_s18 = scalar_lea.vmem %s240_s30, 512  ;;  %p1792_p5 = scmp.lt.s32.totalorder %s240_s30, %s240_s30 }
  0x16   : > { %p1785_p13 = scmp.ne.s32.totalorder %s240_s30, %s1784_s18  ;;  %p1793_p2 = scmp.lt.s32.totalorder %s1784_s18, %s1784_s18 }
  0x18   : > { %p1787_p0 = pnand %p1785_p13, %p1773_p8  ;;  %p1794_p4 = por %p1793_p2, %p1792_p5 }
  0x1a   : > { %p1788_p1 = pneg %p1787_p0 }
  0x1c   : > { %p1795_p3 = pnand %p1794_p4, %p1788_p1 }
  0x1e   : > { %1798 = shalt.err (!%p1795_p3)
}
  0x1f   : > { %s1842_s19 = smov 64   ;;  %s1843_s20 = smov 4  }
  0x20   : > { %1667 = dma.hbm_to_vmem [thread:$0]  (!%p1915_p6), %s2247_s1, 512, %s240_s30, [#allocation5], %s1842_s19, %s1842_s19, %s1843_s20  }
  0x21   : > { %p2259_p7 = scmp.ne.s32.totalorder %s2257_s9, 0 }
  0x22   : > { %p2260_p9 = scmp.eq.s32.totalorder (!%p2259_p7), %s1901_s28, 0 }
  0x23   : > { %283 = sbr.rel (%p2259_p7) target bundleno = 1058 (0x422), region = 52 }
  0x2a   : > { %1830 = dma.done.wait (%p2260_p9), [#allocation5], 512   ;;  %p2261_p8 = pmov %p2260_p9 }
  0x2b   : > { %p317_p2 = scmp.lt.s32.totalorder %s1901_s28, 1  ;;  %p2262_p3 = scmp.ne.s32.totalorder %s1901_s28, 0 }
  0x2c   : > { %1832 = vsyncadd (%p2261_p8), [#allocation5], 4294966784  ;;  %v1691_v0 = vld [vmem:[%s2246_s0 + $0x4] ss:$8 sps:$4 sm:$0xff] (!%p2262_p3)   ;;  %v1693_v1 = vld [vmem:[%s2246_s0] ss:$8 sps:$4 sm:$0xff] (!%p2262_p3)  }
  0x2d   : > { %s318_s23 = scalar_select %p317_p2, %s1901_s28, 1 }
  0x2e   : > { %331 = sbr.rel (%p2262_p3) target bundleno = 295 (0x127), region = 60  ;;  %v1844_v2 = vmov (!%p2262_p3), 0   ;;  %469 = vmatprep.subr.bf16.mxu0 (!%p2262_p3), %v1691_v0  ;;  %1608 = vmatprep.subr.bf16.mxu1 (!%p2262_p3), %v1691_v0  ;;  %v1694_v3 = vld [vmem:[%s2246_s0 + $0x14] ss:$8 sps:$4 sm:$0xff] (!%p2262_p3)   ;;  %v1696_v4 = vld [vmem:[%s2246_s0 + $0x10] ss:$8 sps:$4 sm:$0xff] (!%p2262_p3)  }
  0x2f   : > { %s1606_s24 = sshll.u32 %s318_s23, 5  ;;  %s1607_s25 = sshll.u32 %s318_s23, 6  ;;  %501 = vmatprep.mubr.bf16.mxu0 (!%p2262_p3), %v1844_v2  ;;  %521 = vmatprep.mubr.bf16.mxu1 (!%p2262_p3), %v1844_v2  ;;  %v1697_v5 = vld [vmem:[%s2246_s0 + $0x24] ss:$8 sps:$4 sm:$0xff] (!%p2262_p3)   ;;  %v1699_v6 = vld [vmem:[%s2246_s0 + $0x20] ss:$8 sps:$4 sm:$0xff] (!%p2262_p3)  }
  0x30   : > { %s1946_s10 = scalar_lea.vmem %s2250_s4, %s1606_s24  ;;  %s1951_s11 = scalar_lea.vmem %s2251_s5, %s1607_s25  ;;  %470 = vmatpush1.bf16.msra.mxu0 (!%p2262_p3), %v1693_v1  ;;  %1612 = vmatpush1.bf16.msra.mxu1 (!%p2262_p3), %v1693_v1  ;;  %v1700_v7 = vld [vmem:[%s2246_s0 + $0x34] ss:$8 sps:$4 sm:$0xff] (!%p2262_p3)   ;;  %v348_v9 = vld [vmem:[%s2248_s2] sm:$0xff] (!%p2262_p3)  ;;  %v1702_v10 = vld [vmem:[%s2246_s0 + $0x30] ss:$8 sps:$4 sm:$0xff] (!%p2262_p3)   ;;  %vm456_vm0 = vcmask (!%p2262_p3), 523264  }
  0x31   : > { %471 = vmatprep.subr.bf16.mxu0 (!%p2262_p3), %v1694_v3  ;;  %1609 = vmatprep.subr.bf16.mxu1 (!%p2262_p3), %v1694_v3  ;;  %v350_v8 = vld [vmem:[%s2248_s2 + $0x10] sm:$0xff] (!%p2262_p3)  ;;  %v351_v11 = vld [vmem:[%s2248_s2 + $0x18] sm:$0xff] (!%p2262_p3)  ;;  %v349_v12 = vld [vmem:[%s2248_s2 + $0x8] sm:$0xff] (!%p2262_p3) }
  0x32   : > { %1690 = vset.pattern.permute.xlu1 (!%p2262_p3), %v1844_v2  ;;  %1689 = vset.pattern.permute.xlu0 (!%p2262_p3), %v1844_v2  ;;  %v1703_v13 = vld [vmem:[#allocation4] sm:$0xff] (!%p2262_p3)   ;;  %v1704_v14 = vld [vmem:[#allocation4 + $0x10] sm:$0xff] (!%p2262_p3)   ;;  %v353_v15 = vld [vmem:[%s2248_s2 + $0x28] sm:$0xff] (!%p2262_p3) }
  0x33   : > { %368 = vperm.xlu1 (!%p2262_p3), %1690, %v350_v8   ;;  %358 = vperm.xlu0 (!%p2262_p3), %1689, %v348_v9   ;;  %v352_v16 = vld [vmem:[%s2248_s2 + $0x20] sm:$0xff] (!%p2262_p3)  ;;  %v355_v17 = vld [vmem:[%s2248_s2 + $0x38] sm:$0xff] (!%p2262_p3)  ;;  %v354_v18 = vld [vmem:[%s2248_s2 + $0x30] sm:$0xff] (!%p2262_p3) }
  0x34   : > { %472 = vmatpush1.bf16.msra.mxu0 (!%p2262_p3), %v1696_v4  ;;  %1613 = vmatpush1.bf16.msra.mxu1 (!%p2262_p3), %v1696_v4  ;;  %v1705_v19 = vld [vmem:[#allocation4 + $0x8] sm:$0xff] (!%p2262_p3)   ;;  %v1706_v20 = vld [vmem:[#allocation4 + $0x18] sm:$0xff] (!%p2262_p3)  }
  0x35   : > { %473 = vmatprep.subr.bf16.mxu0 %v1697_v5  ;;  %1610 = vmatprep.subr.bf16.mxu1 %v1697_v5 }
  0x37   : > { %373 = vperm.xlu1 %1690, %v351_v11   ;;  %363 = vperm.xlu0 %1689, %v349_v12  }
  0x38   : > { %474 = vmatpush1.bf16.msra.mxu0 %v1699_v6  ;;  %1614 = vmatpush1.bf16.msra.mxu1 %v1699_v6 }
  0x39   : > { %475 = vmatprep.subr.bf16.mxu0 %v1700_v7  ;;  %1611 = vmatprep.subr.bf16.mxu1 %v1700_v7 }
  0x3b   : > { %383 = vperm.xlu1 %1690, %v353_v15   ;;  %378 = vperm.xlu0 %1689, %v352_v16  }
  0x3c   : > { %476 = vmatpush1.bf16.msra.mxu0 %v1702_v10  ;;  %1615 = vmatpush1.bf16.msra.mxu1 %v1702_v10 }
  0x3f   : > { %1541 = vmatmul.mubr.msk.bf16.vlgmr.msra.gmra.mrb[0].mxu0 %vm456_vm0, %v1703_v13  ;;  %1543 = vmatmul.mubr.msk.bf16.vlgmr.msra.gmra.mrb[0].mxu1 %vm456_vm0, %v1704_v14 }
  0x40   : > { %511 = vmatprep.mubr.bf16.mxu0 %v1844_v2  ;;  %531 = vmatprep.mubr.bf16.mxu1 %v1844_v2 }
  0x41   : > { %393 = vperm.xlu1 %1690, %v355_v17   ;;  %388 = vperm.xlu0 %1689, %v354_v18  }
  0x47   : > { %1542 = vmatmul.mubr.msk.bf16.gmra.mrb[4].mxu0 %vm456_vm0, %v1705_v19  ;;  %1544 = vmatmul.mubr.msk.bf16.gmra.mrb[4].mxu1 %vm456_vm0, %v1706_v20 }
  0xb2   : > { %v359_v21 = vpop.permute.xlu0 %358  ;;  %v369_v22 = vpop.permute.xlu1 %368 }
  0xb6   : > { %v364_v23 = vpop.permute.xlu0 %363  ;;  %v2007_v24 = vpop.permute.xlu1 %373 }
  0xba   : > { %v379_v25 = vpop.permute.xlu0 %378  ;;  %v384_v38 = vpop.permute.xlu1 %383 }
  0xc0   : > { %v389_v55 = vpop.permute.xlu0 %388  ;;  %v394_v12 = vpop.permute.xlu1 %393 }
 0x112   : > { %v503_v26 = vpop.f32.mrb[0].mxu0  ;;  %v523_v27 = vpop.f32.mrb[0].mxu1 }
 0x113   : > { %v504_v28 = vadd.f32 %v503_v26, %v359_v21  ;;  %v524_v29 = vadd.f32 %v523_v27, %v379_v25  ;;  %v505_v30 = vpop.f32.mrb[1].mxu0  ;;  %v525_v31 = vpop.f32.mrb[1].mxu1 }
 0x114   : > { %v506_v32 = vadd.f32 %v505_v30, %v359_v21  ;;  %v526_v33 = vadd.f32 %v525_v31, %v379_v25  ;;  %v507_v34 = vpop.f32.mrb[2].mxu0  ;;  %v527_v35 = vpop.f32.mrb[2].mxu1 }
 0x115   : > { %v542_v36 = vmul.f32 0.1, %v504_v28  ;;  %v550_v37 = vmul.f32 0.1, %v524_v29  ;;  %v574_v41 = vmax.f32 %v504_v28, 0.0  ;;  %v582_v42 = vmax.f32 %v524_v29, 0.0 }
 0x116   : > { %v543_v39 = vmul.f32 0.1, %v506_v32  ;;  %v551_v40 = vmul.f32 0.1, %v526_v33  ;;  %v508_v43 = vadd.f32 %v507_v34, %v364_v23  ;;  %v528_v44 = vadd.f32 %v527_v35, %v384_v38  ;;  %v509_v45 = vpop.f32.mrb[3].mxu0  ;;  %v529_v46 = vpop.f32.mrb[3].mxu1 }
 0x117   : > { %558 = vst [vmem:[#allocation2] sm:$0xff] %v542_v36  ;;  %566 = vst [vmem:[#allocation2 + $0x40] sm:$0xff] %v550_v37  ;;  %v575_v47 = vmax.f32 %v506_v32, 0.0  ;;  %v583_v48 = vmax.f32 %v526_v33, 0.0  ;;  %v510_v49 = vadd.f32 %v509_v45, %v364_v23  ;;  %v530_v50 = vadd.f32 %v529_v46, %v384_v38 }
 0x118   : > { %559 = vst [vmem:[#allocation2 + $0x8] sm:$0xff] %v543_v39  ;;  %567 = vst [vmem:[#allocation2 + $0x48] sm:$0xff] %v551_v40  ;;  %v544_v51 = vmul.f32 0.1, %v508_v43  ;;  %v576_v52 = vmax.f32 %v508_v43, 0.0  ;;  %v584_v54 = vmax.f32 %v528_v44, 0.0 }
 0x119   : > { %v552_v53 = vmul.f32 0.1, %v528_v44  ;;  %v545_v56 = vmul.f32 0.1, %v510_v49  ;;  %v577_v57 = vmax.f32 %v510_v49, 0.0  ;;  %v585_v59 = vmax.f32 %v530_v50, 0.0 }
 0x11a   : > { %v553_v58 = vmul.f32 0.1, %v530_v50  ;;  %560 = vst [vmem:[#allocation2 + $0x10] sm:$0xff] %v544_v51  ;;  %v590_v60 = vpack.c.bf16 %v576_v52, %v574_v41  ;;  %v594_v61 = vpack.c.bf16 %v584_v54, %v582_v42  ;;  %v513_v62 = vpop.f32.mrb[4].mxu0  ;;  %v533_v63 = vpop.f32.mrb[4].mxu1 }
 0x11b   : > { %568 = vst [vmem:[#allocation2 + $0x50] sm:$0xff] %v552_v53  ;;  %561 = vst [vmem:[#allocation2 + $0x18] sm:$0xff] %v545_v56  ;;  %v591_v0 = vpack.c.bf16 %v577_v57, %v575_v47  ;;  %v595_v1 = vpack.c.bf16 %v585_v59, %v583_v48  ;;  %v514_v2 = vadd.f32 %v513_v62, %v369_v22  ;;  %v515_v4 = vpop.f32.mrb[5].mxu0  ;;  %v535_v5 = vpop.f32.mrb[5].mxu1 }
 0x11c   : > { %569 = vst [vmem:[#allocation2 + $0x58] sm:$0xff] %v553_v58  ;;  %v534_v3 = vadd.f32 %v533_v63, %v389_v55  ;;  %598 = vst [vmem:[#allocation3] sm:$0xff] %v590_v60  ;;  %v516_v6 = vadd.f32 %v515_v4, %v369_v22  ;;  %v536_v7 = vadd.f32 %v535_v5, %v389_v55  ;;  %v517_v8 = vpop.f32.mrb[6].mxu0  ;;  %v537_v9 = vpop.f32.mrb[6].mxu1 }
 0x11d   : > { %602 = vst [vmem:[#allocation3 + $0x20] sm:$0xff] %v594_v61  ;;  %599 = vst [vmem:[#allocation3 + $0x8] sm:$0xff] %v591_v0  ;;  %v546_v10 = vmul.f32 0.1, %v514_v2  ;;  %v578_v15 = vmax.f32 %v514_v2, 0.0  ;;  %v518_v17 = vadd.f32 %v517_v8, %v2007_v24  ;;  %v538_v18 = vadd.f32 %v537_v9, %v394_v12  ;;  %v519_v19 = vpop.f32.mrb[7].mxu0 }
 0x11e   : > { %603 = vst [vmem:[#allocation3 + $0x28] sm:$0xff] %v595_v1  ;;  %v554_v11 = vmul.f32 0.1, %v534_v3  ;;  %v547_v13 = vmul.f32 0.1, %v516_v6  ;;  %v586_v16 = vmax.f32 %v534_v3, 0.0  ;;  %v520_v23 = vadd.f32 %v519_v19, %v2007_v24 }
 0x11f   : > { %v555_v14 = vmul.f32 0.1, %v536_v7  ;;  %562 = vst [vmem:[#allocation2 + $0x20] sm:$0xff] %v546_v10  ;;  %v539_v20 = vpop.f32.mrb[7].mxu1  ;;  %v579_v21 = vmax.f32 %v516_v6, 0.0  ;;  %v587_v22 = vmax.f32 %v536_v7, 0.0 }
 0x120   : > { %570 = vst [vmem:[#allocation2 + $0x60] sm:$0xff] %v554_v11  ;;  %563 = vst [vmem:[#allocation2 + $0x28] sm:$0xff] %v547_v13  ;;  %v540_v25 = vadd.f32 %v539_v20, %v394_v12  ;;  %v548_v26 = vmul.f32 0.1, %v518_v17  ;;  %v580_v27 = vmax.f32 %v518_v17, 0.0  ;;  %v588_v29 = vmax.f32 %v538_v18, 0.0 }
 0x121   : > { %571 = vst [vmem:[#allocation2 + $0x68] sm:$0xff] %v555_v14  ;;  %v556_v28 = vmul.f32 0.1, %v538_v18  ;;  %v549_v30 = vmul.f32 0.1, %v520_v23  ;;  %v581_v31 = vmax.f32 %v520_v23, 0.0 }
 0x122   : > { %v557_v32 = vmul.f32 0.1, %v540_v25  ;;  %v589_v33 = vmax.f32 %v540_v25, 0.0  ;;  %564 = vst [vmem:[#allocation2 + $0x30] sm:$0xff] %v548_v26  ;;  %v592_v34 = vpack.c.bf16 %v580_v27, %v578_v15  ;;  %v596_v35 = vpack.c.bf16 %v588_v29, %v586_v16 }
 0x123   : > { %572 = vst [vmem:[#allocation2 + $0x70] sm:$0xff] %v556_v28  ;;  %565 = vst [vmem:[#allocation2 + $0x38] sm:$0xff] %v549_v30  ;;  %v593_v36 = vpack.c.bf16 %v581_v31, %v579_v21 }
 0x124   : > { %573 = vst [vmem:[#allocation2 + $0x78] sm:$0xff] %v557_v32  ;;  %v597_v37 = vpack.c.bf16 %v589_v33, %v587_v22  ;;  %600 = vst [vmem:[#allocation3 + $0x10] sm:$0xff] %v592_v34 }
 0x125   : > { %604 = vst [vmem:[#allocation3 + $0x30] sm:$0xff] %v596_v35  ;;  %601 = vst [vmem:[#allocation3 + $0x18] sm:$0xff] %v593_v36 }
 0x126   : > { %605 = vst [vmem:[#allocation3 + $0x38] sm:$0xff] %v597_v37 }
 0x127 PF: > { %v615_v24 = vld [vmem:[#allocation3 + $0x8] sm:$0xff]  ;;  %v614_v38 = vld [vmem:[#allocation3] sm:$0xff]  ;;  %v1845_v40 = vmov 0   ;;  %v1718_v47 = vld [vmem:[%s2249_s3 + $0x14] ss:$8 sps:$4 sm:$0xff]   ;;  %vm642_vm1 = vcmask 523264  }
 0x128   : > { %655 = vmatprep.subr.bf16.mxu0 %v615_v24  ;;  %687 = vmatprep.mubr.bf16.mxu0 %v1845_v40  ;;  %v619_v42 = vld [vmem:[#allocation3 + $0x28] sm:$0xff]  ;;  %v618_v43 = vld [vmem:[#allocation3 + $0x20] sm:$0xff]  ;;  %v1716_v50 = vld [vmem:[%s2249_s3 + $0x10] ss:$8 sps:$4 sm:$0xff]   ;;  %p1585_p4 = scmp.ne.s32.totalorder %s1901_s28, 1 }
 0x129   : > { %656 = vmatpush1.bf16.msra.mxu0 %v614_v38  ;;  %1707 = vset.pattern.permute.xlu0 %v1845_v40  ;;  %v1715_v45 = vld [vmem:[%s2249_s3 + $0x4] ss:$8 sps:$4 sm:$0xff]   ;;  %v1713_v46 = vld [vmem:[%s2249_s3] ss:$8 sps:$4 sm:$0xff]   ;;  %v1724_v53 = vld [vmem:[%s2249_s3 + $0x34] ss:$8 sps:$4 sm:$0xff]  }
 0x12a   : > { %1708 = vset.pattern.permute.xlu1 %v1845_v40  ;;  %1616 = vmatprep.subr.bf16.mxu1 %v1715_v45  ;;  %v1709_v49 = vld [vmem:[%s1946_s10] sm:$0xff]   ;;  %v1710_v54 = vld [vmem:[%s1946_s10 + $0x8] sm:$0xff]   ;;  %v1722_v55 = vld [vmem:[%s2249_s3 + $0x30] ss:$8 sps:$4 sm:$0xff]  }
 0x12b   : > { %v616_v41 = vld [vmem:[#allocation3 + $0x10] sm:$0xff]  ;;  %1632 = vmatpush1.bf16.msra.mxu1 %v1713_v46  ;;  %v1721_v51 = vld [vmem:[%s2249_s3 + $0x24] ss:$8 sps:$4 sm:$0xff]   ;;  %v1719_v52 = vld [vmem:[%s2249_s3 + $0x20] ss:$8 sps:$4 sm:$0xff]  }
 0x12c   : > { %v617_v39 = vld [vmem:[#allocation3 + $0x18] sm:$0xff]  ;;  %v620_v48 = vld [vmem:[#allocation3 + $0x30] sm:$0xff]  ;;  %1617 = vmatprep.subr.bf16.mxu1 %v1718_v47  ;;  %v1727_v56 = vld [vmem:[%s2249_s3 + $0x44] ss:$8 sps:$4 sm:$0xff]  }
 0x12d   : > { %657 = vmatprep.subr.bf16.mxu0 %v617_v39  ;;  %v621_v44 = vld [vmem:[#allocation3 + $0x38] sm:$0xff]  ;;  %v1725_v57 = vld [vmem:[%s2249_s3 + $0x40] ss:$8 sps:$4 sm:$0xff]   ;;  %v1711_v59 = vld [vmem:[%s1946_s10 + $0x10] sm:$0xff]  }
 0x12e   : > { %658 = vmatpush1.bf16.msra.mxu0 %v616_v41  ;;  %v1730_v58 = vld [vmem:[%s2249_s3 + $0x54] ss:$8 sps:$4 sm:$0xff]   ;;  %v1728_v60 = vld [vmem:[%s2249_s3 + $0x50] ss:$8 sps:$4 sm:$0xff]   ;;  %v1733_v61 = vld [vmem:[%s2249_s3 + $0x64] ss:$8 sps:$4 sm:$0xff]  }
 0x12f   : > { %659 = vmatprep.subr.bf16.mxu0 %v619_v42  ;;  %1633 = vmatpush1.bf16.msra.mxu1 %v1716_v50  ;;  %v1731_v62 = vld [vmem:[%s2249_s3 + $0x60] ss:$8 sps:$4 sm:$0xff]   ;;  %v1736_v63 = vld [vmem:[%s2249_s3 + $0x74] ss:$8 sps:$4 sm:$0xff]   ;;  %v1734_v1 = vld [vmem:[%s2249_s3 + $0x70] ss:$8 sps:$4 sm:$0xff]  }
 0x130   : > { %1618 = vmatprep.subr.bf16.mxu1 %v1721_v51  ;;  %v1712_v0 = vld [vmem:[%s1946_s10 + $0x18] sm:$0xff]   ;;  %v1739_v2 = vld [vmem:[%s2249_s3 + $0x84] ss:$8 sps:$4 sm:$0xff]   ;;  %v1737_v3 = vld [vmem:[%s2249_s3 + $0x80] ss:$8 sps:$4 sm:$0xff]  }
 0x131   : > { %v1742_v4 = vld [vmem:[%s2249_s3 + $0x94] ss:$8 sps:$4 sm:$0xff]   ;;  %v1740_v5 = vld [vmem:[%s2249_s3 + $0x90] ss:$8 sps:$4 sm:$0xff]   ;;  %v1745_v6 = vld [vmem:[%s2249_s3 + $0xa4] ss:$8 sps:$4 sm:$0xff]  }
 0x132   : > { %660 = vmatpush1.bf16.msra.mxu0 %v618_v43  ;;  %v1743_v7 = vld [vmem:[%s2249_s3 + $0xa0] ss:$8 sps:$4 sm:$0xff]   ;;  %v1748_v8 = vld [vmem:[%s2249_s3 + $0xb4] ss:$8 sps:$4 sm:$0xff]   ;;  %v1746_v9 = vld [vmem:[%s2249_s3 + $0xb0] ss:$8 sps:$4 sm:$0xff]  }
 0x133   : > { %661 = vmatprep.subr.bf16.mxu0 %v621_v44  ;;  %1634 = vmatpush1.bf16.msra.mxu1 %v1719_v52  ;;  %v1751_v10 = vld [vmem:[%s2249_s3 + $0xc4] ss:$8 sps:$4 sm:$0xff]   ;;  %v1749_v11 = vld [vmem:[%s2249_s3 + $0xc0] ss:$8 sps:$4 sm:$0xff]   ;;  %v1754_v12 = vld [vmem:[%s2249_s3 + $0xd4] ss:$8 sps:$4 sm:$0xff]  }
 0x134   : > { %1619 = vmatprep.subr.bf16.mxu1 %v1724_v53  ;;  %v1752_v13 = vld [vmem:[%s2249_s3 + $0xd0] ss:$8 sps:$4 sm:$0xff]   ;;  %v1757_v14 = vld [vmem:[%s2249_s3 + $0xe4] ss:$8 sps:$4 sm:$0xff]   ;;  %v1755_v15 = vld [vmem:[%s2249_s3 + $0xe0] ss:$8 sps:$4 sm:$0xff]  }
 0x135   : > { %v1760_v16 = vld [vmem:[%s2249_s3 + $0xf4] ss:$8 sps:$4 sm:$0xff]   ;;  %v1758_v17 = vld [vmem:[%s2249_s3 + $0xf0] ss:$8 sps:$4 sm:$0xff]   ;;  %v1017_v18 = vld [vmem:[%s1951_s11] sm:$0xff] }
 0x136   : > { %662 = vmatpush1.bf16.msra.mxu0 %v620_v48  ;;  %v1019_v19 = vld [vmem:[%s1951_s11 + $0x10] sm:$0xff]  ;;  %1027 = vperm.xlu0 %1707, %v1017_v18   ;;  %v1018_v20 = vld [vmem:[%s1951_s11 + $0x8] sm:$0xff]  ;;  %v1020_v21 = vld [vmem:[%s1951_s11 + $0x18] sm:$0xff] }
 0x137   : > { %944 = vmatprep.subr.bf16.mxu0 %v1715_v45  ;;  %1635 = vmatpush1.bf16.msra.mxu1 %v1722_v55  ;;  %v1022_v22 = vld [vmem:[%s1951_s11 + $0x28] sm:$0xff]  ;;  %v1021_v23 = vld [vmem:[%s1951_s11 + $0x20] sm:$0xff]  ;;  %v1024_v25 = vld [vmem:[%s1951_s11 + $0x38] sm:$0xff] }
 0x138   : > { %1620 = vmatprep.subr.bf16.mxu1 %v1727_v56  ;;  %1037 = vperm.xlu1 %1708, %v1019_v19   ;;  %v1023_v26 = vld [vmem:[%s1951_s11 + $0x30] sm:$0xff] }
 0x139   : > { %1549 = vmatmul.mubr.msk.bf16.vlgmr.msra.gmra.mrb[0].mxu0 %vm642_vm1, %v1709_v49 }
 0x13a   : > { %697 = vmatprep.mubr.bf16.mxu0 %v1845_v40  ;;  %945 = vmatpush1.bf16.msra.mxu0 %v1713_v46 }
 0x13b   : > { %946 = vmatprep.subr.bf16.mxu0 %v1718_v47  ;;  %1636 = vmatpush1.bf16.msra.mxu1 %v1725_v57 }
 0x13c   : > { %1621 = vmatprep.subr.bf16.mxu1 %v1730_v58  ;;  %1032 = vperm.xlu0 %1707, %v1018_v20  }
 0x13d   : > { %1042 = vperm.xlu1 %1708, %v1020_v21  }
 0x13e   : > { %947 = vmatpush1.bf16.msra.mxu0 %v1716_v50 }
 0x13f   : > { %948 = vmatprep.subr.bf16.mxu0 %v1721_v51  ;;  %1637 = vmatpush1.bf16.msra.mxu1 %v1728_v60  ;;  %v768_v51 = vld [vmem:[#allocation2] sm:$0xff] }
 0x140   : > { %1622 = vmatprep.subr.bf16.mxu1 %v1733_v61  ;;  %1047 = vperm.xlu0 %1707, %v1021_v23  }
 0x141   : > { %1550 = vmatmul.mubr.msk.bf16.gmra.mrb[4].mxu0 %vm642_vm1, %v1710_v54  ;;  %1052 = vperm.xlu1 %1708, %v1022_v22   ;;  %v770_v54 = vld [vmem:[#allocation2 + $0x10] sm:$0xff] }
 0x142   : > { %707 = vmatprep.mubr.bf16.mxu0 %v1845_v40  ;;  %949 = vmatpush1.bf16.msra.mxu0 %v1719_v52  ;;  %v769_v52 = vld [vmem:[#allocation2 + $0x8] sm:$0xff] }
 0x143   : > { %950 = vmatprep.subr.bf16.mxu0 %v1724_v53  ;;  %1638 = vmatpush1.bf16.msra.mxu1 %v1731_v62 }
 0x144   : > { %1623 = vmatprep.subr.bf16.mxu1 %v1736_v63  ;;  %1057 = vperm.xlu0 %1707, %v1023_v26  }
 0x145   : > { %1062 = vperm.xlu1 %1708, %v1024_v25  }
 0x146   : > { %951 = vmatpush1.bf16.msra.mxu0 %v1722_v55 }
 0x147   : > { %952 = vmatprep.subr.bf16.mxu0 %v1727_v56  ;;  %1639 = vmatpush1.bf16.msra.mxu1 %v1734_v1 }
 0x148   : > { %1624 = vmatprep.subr.bf16.mxu1 %v1739_v2 }
 0x149   : > { %1551 = vmatmul.mubr.msk.bf16.gmra.mrb[8].mxu0 %vm642_vm1, %v1711_v59 }
 0x14a   : > { %717 = vmatprep.mubr.bf16.mxu0 %v1845_v40  ;;  %953 = vmatpush1.bf16.msra.mxu0 %v1725_v57  ;;  %v771_v57 = vld [vmem:[#allocation2 + $0x18] sm:$0xff] }
 0x14b   : > { %954 = vmatprep.subr.bf16.mxu0 %v1730_v58  ;;  %1640 = vmatpush1.bf16.msra.mxu1 %v1737_v3 }
 0x14c   : > { %1625 = vmatprep.subr.bf16.mxu1 %v1742_v4 }
 0x14e   : > { %955 = vmatpush1.bf16.msra.mxu0 %v1728_v60 }
 0x14f   : > { %956 = vmatprep.subr.bf16.mxu0 %v1733_v61  ;;  %1641 = vmatpush1.bf16.msra.mxu1 %v1740_v5 }
 0x150   : > { %1626 = vmatprep.subr.bf16.mxu1 %v1745_v6 }
 0x151   : > { %1552 = vmatmul.mubr.msk.bf16.gmra.mrb[12].mxu0 %vm642_vm1, %v1712_v0 }
 0x152   : > { %957 = vmatpush1.bf16.msra.mxu0 %v1731_v62 }
 0x153   : > { %958 = vmatprep.subr.bf16.mxu0 %v1736_v63  ;;  %1642 = vmatpush1.bf16.msra.mxu1 %v1743_v7 }
 0x154   : > { %1627 = vmatprep.subr.bf16.mxu1 %v1748_v8 }
 0x156   : > { %959 = vmatpush1.bf16.msra.mxu0 %v1734_v1 }
 0x157   : > { %960 = vmatprep.subr.bf16.mxu0 %v1739_v2  ;;  %1643 = vmatpush1.bf16.msra.mxu1 %v1746_v9 }
 0x158   : > { %1628 = vmatprep.subr.bf16.mxu1 %v1751_v10 }
 0x15a   : > { %961 = vmatpush1.bf16.msra.mxu0 %v1737_v3 }
 0x15b   : > { %962 = vmatprep.subr.bf16.mxu0 %v1742_v4  ;;  %1644 = vmatpush1.bf16.msra.mxu1 %v1749_v11 }
 0x15c   : > { %1629 = vmatprep.subr.bf16.mxu1 %v1754_v12 }
 0x15e   : > { %963 = vmatpush1.bf16.msra.mxu0 %v1740_v5  ;;  %v772_v5 = vld [vmem:[#allocation2 + $0x20] sm:$0xff] }
 0x15f   : > { %964 = vmatprep.subr.bf16.mxu0 %v1745_v6  ;;  %1645 = vmatpush1.bf16.msra.mxu1 %v1752_v13 }
 0x160   : > { %1630 = vmatprep.subr.bf16.mxu1 %v1757_v14 }
 0x162   : > { %965 = vmatpush1.bf16.msra.mxu0 %v1743_v7 }
 0x163   : > { %966 = vmatprep.subr.bf16.mxu0 %v1748_v8  ;;  %1646 = vmatpush1.bf16.msra.mxu1 %v1755_v15  ;;  %v773_v8 = vld [vmem:[#allocation2 + $0x28] sm:$0xff] }
 0x164   : > { %1631 = vmatprep.subr.bf16.mxu1 %v1760_v16 }
 0x166   : > { %967 = vmatpush1.bf16.msra.mxu0 %v1746_v9 }
 0x167   : > { %968 = vmatprep.subr.bf16.mxu0 %v1751_v10  ;;  %1647 = vmatpush1.bf16.msra.mxu1 %v1758_v17 }
 0x16a   : > { %969 = vmatpush1.bf16.msra.mxu0 %v1749_v11 }
 0x16b   : > { %970 = vmatprep.subr.bf16.mxu0 %v1754_v12  ;;  %v774_v12 = vld [vmem:[#allocation2 + $0x30] sm:$0xff] }
 0x16e   : > { %971 = vmatpush1.bf16.msra.mxu0 %v1752_v13 }
 0x16f   : > { %972 = vmatprep.subr.bf16.mxu0 %v1757_v14 }
 0x172   : > { %973 = vmatpush1.bf16.msra.mxu0 %v1755_v15 }
 0x173   : > { %974 = vmatprep.subr.bf16.mxu0 %v1760_v16  ;;  %v775_v16 = vld [vmem:[#allocation2 + $0x38] sm:$0xff] }
 0x176   : > { %975 = vmatpush1.bf16.msra.mxu0 %v1758_v17 }
 0x1b5   : > { %v1028_v50 = vpop.permute.xlu0 %1027 }
 0x1b7   : > { %v1038_v4 = vpop.permute.xlu1 %1037 }
 0x1bb   : > { %v1033_v60 = vpop.permute.xlu0 %1032 }
 0x1bc   : > { %v1043_v23 = vpop.permute.xlu1 %1042 }
 0x20c   : > { %v689_v27 = vpop.f32.mrb[0].mxu0 }
 0x20d   : > { %v691_v28 = vpop.f32.mrb[1].mxu0 }
 0x20e   : > { %v693_v29 = vpop.f32.mrb[2].mxu0 }
 0x20f   : > { %v728_v30 = vpack.c.bf16 %v693_v29, %v689_v27  ;;  %v695_v31 = vpop.f32.mrb[3].mxu0  ;;  %v776_v29 = vld [vmem:[#allocation2 + $0x40] sm:$0xff] }
 0x210   : > { %v729_v32 = vpack.c.bf16 %v695_v31, %v691_v28 }
 0x212   : > { %976 = vmatprep.mubr.bf16.mxu0 %v729_v32  ;;  %v777_v32 = vld [vmem:[#allocation2 + $0x48] sm:$0xff] }
 0x213   : > { %977 = vmatmul.mubr.bf16.vlgmr.msra.gmra.mrb[16].mxu0 %v728_v30 }
 0x214   : > { %v699_v33 = vpop.f32.mrb[4].mxu0 }
 0x215   : > { %v701_v34 = vpop.f32.mrb[5].mxu0 }
 0x216   : > { %v703_v35 = vpop.f32.mrb[6].mxu0 }
 0x217   : > { %v730_v36 = vpack.c.bf16 %v703_v35, %v699_v33  ;;  %v705_v37 = vpop.f32.mrb[7].mxu0 }
 0x218   : > { %v731_v24 = vpack.c.bf16 %v705_v37, %v701_v34 }
 0x21a   : > { %986 = vmatprep.mubr.bf16.mxu1 %v731_v24 }
 0x21b   : > { %987 = vmatmul.mubr.bf16.vlgmr.msra.gmra.mrb[0].mxu1 %v730_v36  ;;  %v778_v36 = vld [vmem:[#allocation2 + $0x50] sm:$0xff] }
 0x21c   : > { %v709_v38 = vpop.f32.mrb[8].mxu0 }
 0x21d   : > { %v711_v39 = vpop.f32.mrb[9].mxu0 }
 0x21e   : > { %v713_v40 = vpop.f32.mrb[10].mxu0 }
 0x21f   : > { %v732_v41 = vpack.c.bf16 %v713_v40, %v709_v38  ;;  %v715_v42 = vpop.f32.mrb[11].mxu0 }
 0x220   : > { %v733_v43 = vpack.c.bf16 %v715_v42, %v711_v39  ;;  %v779_v39 = vld [vmem:[#allocation2 + $0x58] sm:$0xff] }
 0x222   : > { %996 = vmatprep.mubr.bf16.mxu1 %v733_v43 }
 0x223   : > { %997 = vmatmul.mubr.bf16.gmra.mrb[4].mxu1 %v732_v41  ;;  %v1048_v41 = vpop.permute.xlu0 %1047 }
 0x224   : > { %v719_v44 = vpop.f32.mrb[12].mxu0 }
 0x225   : > { %v721_v45 = vpop.f32.mrb[13].mxu0 }
 0x226   : > { %v723_v46 = vpop.f32.mrb[14].mxu0 }
 0x227   : > { %v734_v47 = vpack.c.bf16 %v723_v46, %v719_v44  ;;  %v725_v48 = vpop.f32.mrb[15].mxu0 }
 0x228   : > { %v735_v49 = vpack.c.bf16 %v725_v48, %v721_v45 }
 0x22a   : > { %1006 = vmatprep.mubr.bf16.mxu1 %v735_v49 }
 0x22b   : > { %1007 = vmatmul.mubr.bf16.gmra.mrb[8].mxu1 %v734_v47  ;;  %v1053_v47 = vpop.permute.xlu1 %1052 }
 0x2e6   : > { %v978_v53 = vpop.f32.mrb[16].mxu0 }
 0x2e7   : > { %v979_v55 = vadd.f32 %v978_v53, %v768_v51  ;;  %v980_v56 = vpop.f32.mrb[17].mxu0 }
 0x2e8   : > { %v981_v58 = vadd.f32 %v980_v56, %v769_v52  ;;  %v982_v59 = vpop.f32.mrb[18].mxu0  ;;  %v780_v52 = vld [vmem:[#allocation2 + $0x60] sm:$0xff] }
 0x2e9   : > { %v1065_v61 = vadd.f32 %v1028_v50, %v979_v55  ;;  %v983_v62 = vadd.f32 %v982_v59, %v770_v54  ;;  %v984_v63 = vpop.f32.mrb[19].mxu0  ;;  %v781_v55 = vld [vmem:[#allocation2 + $0x68] sm:$0xff]  ;;  %v782_v59 = vld [vmem:[#allocation2 + $0x70] sm:$0xff] }
 0x2ea   : > { %v1066_v0 = vadd.f32 %v1028_v50, %v981_v58  ;;  %v985_v1 = vadd.f32 %v984_v63, %v771_v57  ;;  %v783_v63 = vld [vmem:[#allocation2 + $0x78] sm:$0xff] }
 0x2eb   : > { %v1067_v2 = vadd.f32 %v1033_v60, %v983_v62  ;;  %v1081_v6 = vmax.f32 %v1065_v61, 0.0 }
 0x2ec   : > { %v1068_v3 = vadd.f32 %v1033_v60, %v985_v1  ;;  %v1082_v9 = vmax.f32 %v1066_v0, 0.0  ;;  %v1058_v0 = vpop.permute.xlu0 %1057 }
 0x2ed   : > { %v1083_v7 = vmax.f32 %v1067_v2, 0.0 }
 0x2ee   : > { %v1084_v10 = vmax.f32 %v1068_v3, 0.0  ;;  %v988_v11 = vpop.f32.mrb[0].mxu1 }
 0x2ef   : > { %v1097_v13 = vpack.c.bf16 %v1083_v7, %v1081_v6  ;;  %v989_v14 = vadd.f32 %v988_v11, %v772_v5  ;;  %v990_v15 = vpop.f32.mrb[1].mxu1  ;;  %v1063_v7 = vpop.permute.xlu1 %1062 }
 0x2f0   : > { %v1098_v17 = vpack.c.bf16 %v1084_v10, %v1082_v9  ;;  %v991_v18 = vadd.f32 %v990_v15, %v773_v8  ;;  %v992_v19 = vpop.f32.mrb[2].mxu1 }
 0x2f1   : > { %1105 = vst [vmem:[#allocation3] sm:$0xff] %v1097_v13  ;;  %v1069_v20 = vadd.f32 %v1038_v4, %v989_v14  ;;  %v993_v21 = vadd.f32 %v992_v19, %v774_v12  ;;  %v994_v22 = vpop.f32.mrb[3].mxu1 }
 0x2f2   : > { %1106 = vst [vmem:[#allocation3 + $0x8] sm:$0xff] %v1098_v17  ;;  %v1070_v25 = vadd.f32 %v1038_v4, %v991_v18  ;;  %v995_v26 = vadd.f32 %v994_v22, %v775_v16 }
 0x2f3   : > { %v1071_v27 = vadd.f32 %v1043_v23, %v993_v21  ;;  %v1085_v30 = vmax.f32 %v1069_v20, 0.0 }
 0x2f4   : > { %v1072_v28 = vadd.f32 %v1043_v23, %v995_v26  ;;  %v1086_v33 = vmax.f32 %v1070_v25, 0.0  ;;  %v1846_v23 = vmov (!%p1585_p4), 0  }
 0x2f5   : > { %v1087_v31 = vmax.f32 %v1071_v27, 0.0  ;;  %1333 = vmatprep.mubr.bf16.mxu0 (!%p1585_p4), %v1846_v23  ;;  %1373 = vmatprep.mubr.bf16.mxu1 (!%p1585_p4), %v1846_v23  ;;  %v1143_v27 = vld [vmem:[%s2253_s7 + $0x10] sm:$0xff] (!%p1585_p4) }
 0x2f6   : > { %v1088_v34 = vmax.f32 %v1072_v28, 0.0  ;;  %v998_v35 = vpop.f32.mrb[4].mxu1  ;;  %1762 = vset.pattern.permute.xlu1 (!%p1585_p4), %v1846_v23  ;;  %1761 = vset.pattern.permute.xlu0 (!%p1585_p4), %v1846_v23 }
 0x2f7   : > { %v1099_v37 = vpack.c.bf16 %v1087_v31, %v1085_v30  ;;  %v999_v24 = vadd.f32 %v998_v35, %v776_v29  ;;  %v1000_v38 = vpop.f32.mrb[5].mxu1  ;;  %v1141_v29 = vld [vmem:[%s2253_s7] sm:$0xff] (!%p1585_p4)  ;;  %1169 = vperm.xlu1 (!%p1585_p4), %1762, %v1143_v27  }
 0x2f8   : > { %v1100_v40 = vpack.c.bf16 %v1088_v34, %v1086_v33  ;;  %v1001_v42 = vadd.f32 %v1000_v38, %v777_v32  ;;  %v1002_v43 = vpop.f32.mrb[6].mxu1  ;;  %v1133_v19 = vld [vmem:[#allocation3] sm:$0xff] (!%p1585_p4)  ;;  %1159 = vperm.xlu0 (!%p1585_p4), %1761, %v1141_v29   ;;  %v1144_v32 = vld [vmem:[%s2253_s7 + $0x18] sm:$0xff] (!%p1585_p4)  ;;  %v1142_v33 = vld [vmem:[%s2253_s7 + $0x8] sm:$0xff] (!%p1585_p4) }
 0x2f9   : > { %1107 = vst [vmem:[#allocation3 + $0x10] sm:$0xff] %v1099_v37  ;;  %v1073_v44 = vadd.f32 %v1048_v41, %v999_v24  ;;  %v1003_v45 = vadd.f32 %v1002_v43, %v778_v36  ;;  %v1004_v46 = vpop.f32.mrb[7].mxu1  ;;  %v1134_v18 = vld [vmem:[#allocation3 + $0x8] sm:$0xff] (!%p1585_p4)  ;;  %v1763_v30 = vld [vmem:[%s2252_s6] sm:$0xff] (!%p1585_p4)   ;;  %v1148_v24 = vld [vmem:[%s2253_s7 + $0x38] sm:$0xff] (!%p1585_p4) }
 0x2fa   : > { %1108 = vst [vmem:[#allocation3 + $0x18] sm:$0xff] %v1100_v40  ;;  %v1074_v48 = vadd.f32 %v1048_v41, %v1001_v42  ;;  %v1005_v49 = vadd.f32 %v1004_v46, %v779_v39  ;;  %1301 = vmatprep.subr.bf16.mxu0 (!%p1585_p4), %v1134_v18  ;;  %1648 = vmatprep.subr.bf16.mxu1 (!%p1585_p4), %v1134_v18  ;;  %v1764_v31 = vld [vmem:[%s2252_s6 + $0x20] sm:$0xff] (!%p1585_p4)   ;;  %v1146_v34 = vld [vmem:[%s2253_s7 + $0x28] sm:$0xff] (!%p1585_p4)  ;;  %v1147_v38 = vld [vmem:[%s2253_s7 + $0x30] sm:$0xff] (!%p1585_p4) }
 0x2fb   : > { %v1075_v50 = vadd.f32 %v1053_v47, %v1003_v45  ;;  %v1089_v53 = vmax.f32 %v1073_v44, 0.0  ;;  %1302 = vmatpush1.bf16.msra.mxu0 (!%p1585_p4), %v1133_v19  ;;  %1652 = vmatpush1.bf16.msra.mxu1 (!%p1585_p4), %v1133_v19  ;;  %v1145_v35 = vld [vmem:[%s2253_s7 + $0x20] sm:$0xff] (!%p1585_p4)  ;;  %v1765_v36 = vld [vmem:[%s2252_s6 + $0x8] sm:$0xff] (!%p1585_p4)   ;;  %v1767_v41 = vld [vmem:[%s2252_s6 + $0x10] sm:$0xff] (!%p1585_p4)  }
 0x2fc   : > { %v1076_v51 = vadd.f32 %v1053_v47, %v1005_v49  ;;  %v1090_v56 = vmax.f32 %v1074_v48, 0.0  ;;  %1174 = vperm.xlu1 (!%p1585_p4), %1762, %v1144_v32   ;;  %1164 = vperm.xlu0 (!%p1585_p4), %1761, %v1142_v33   ;;  %v1766_v37 = vld [vmem:[%s2252_s6 + $0x28] sm:$0xff] (!%p1585_p4)   ;;  %v1149_v40 = vld [vmem:[%s2253_s7 + $0x40] sm:$0xff] (!%p1585_p4)  ;;  %v1768_v42 = vld [vmem:[%s2252_s6 + $0x30] sm:$0xff] (!%p1585_p4)  }
 0x2fd   : > { %v1091_v54 = vmax.f32 %v1075_v50, 0.0  ;;  %v1150_v39 = vld [vmem:[%s2253_s7 + $0x48] sm:$0xff] (!%p1585_p4)  ;;  %v1152_v43 = vld [vmem:[%s2253_s7 + $0x58] sm:$0xff] (!%p1585_p4)  ;;  %v1151_v44 = vld [vmem:[%s2253_s7 + $0x50] sm:$0xff] (!%p1585_p4) }
 0x2fe   : > { %v1092_v57 = vmax.f32 %v1076_v51, 0.0  ;;  %v1008_v58 = vpop.f32.mrb[8].mxu1  ;;  %v1154_v45 = vld [vmem:[%s2253_s7 + $0x68] sm:$0xff] (!%p1585_p4)  ;;  %v1153_v46 = vld [vmem:[%s2253_s7 + $0x60] sm:$0xff] (!%p1585_p4)  ;;  %v1769_v47 = vld [vmem:[%s2252_s6 + $0x18] sm:$0xff] (!%p1585_p4)  }
 0x2ff   : > { %v1101_v60 = vpack.c.bf16 %v1091_v54, %v1089_v53  ;;  %v1009_v61 = vadd.f32 %v1008_v58, %v780_v52  ;;  %v1010_v62 = vpop.f32.mrb[9].mxu1  ;;  %v1770_v48 = vld [vmem:[%s2252_s6 + $0x38] sm:$0xff] (!%p1585_p4)   ;;  %v1155_v50 = vld [vmem:[%s2253_s7 + $0x70] sm:$0xff] (!%p1585_p4) }
 0x300   : > { %v1102_v1 = vpack.c.bf16 %v1092_v57, %v1090_v56  ;;  %v1011_v2 = vadd.f32 %v1010_v62, %v781_v55  ;;  %v1012_v3 = vpop.f32.mrb[10].mxu1  ;;  %v1135_v21 = vld [vmem:[#allocation3 + $0x10] sm:$0xff] (!%p1585_p4)  ;;  %1184 = vperm.xlu1 (!%p1585_p4), %1762, %v1146_v34   ;;  %1179 = vperm.xlu0 (!%p1585_p4), %1761, %v1145_v35   ;;  %v1156_v49 = vld [vmem:[%s2253_s7 + $0x78] sm:$0xff] (!%p1585_p4) }
 0x301   : > { %1109 = vst [vmem:[#allocation3 + $0x20] sm:$0xff] %v1101_v60  ;;  %v1077_v4 = vadd.f32 %v1058_v0, %v1009_v61  ;;  %v1013_v5 = vadd.f32 %v1012_v3, %v782_v59  ;;  %v1014_v6 = vpop.f32.mrb[11].mxu1  ;;  %v1136_v20 = vld [vmem:[#allocation3 + $0x18] sm:$0xff] (!%p1585_p4) }
 0x302   : > { %1110 = vst [vmem:[#allocation3 + $0x28] sm:$0xff] %v1102_v1  ;;  %v1078_v8 = vadd.f32 %v1058_v0, %v1011_v2  ;;  %v1015_v9 = vadd.f32 %v1014_v6, %v783_v63  ;;  %1303 = vmatprep.subr.bf16.mxu0 (!%p1585_p4), %v1136_v20  ;;  %1649 = vmatprep.subr.bf16.mxu1 (!%p1585_p4), %v1136_v20 }
 0x303   : > { %v1079_v10 = vadd.f32 %v1063_v7, %v1013_v5  ;;  %v1093_v12 = vmax.f32 %v1077_v4, 0.0  ;;  %1304 = vmatpush1.bf16.msra.mxu0 (!%p1585_p4), %v1135_v21  ;;  %1653 = vmatpush1.bf16.msra.mxu1 (!%p1585_p4), %v1135_v21 }
 0x304   : > { %v1080_v11 = vadd.f32 %v1063_v7, %v1015_v9  ;;  %v1094_v14 = vmax.f32 %v1078_v8, 0.0  ;;  %1116 = sbr.rel (%p1585_p4) target bundleno = 1032 (0x408), region = 64  ;;  %1194 = vperm.xlu1 (!%p1585_p4), %1762, %v1148_v24   ;;  %1189 = vperm.xlu0 (!%p1585_p4), %1761, %v1147_v38  }
 0x305   : > { %v1095_v13 = vmax.f32 %v1079_v10, 0.0 }
 0x306   : > { %v1096_v15 = vmax.f32 %v1080_v11, 0.0 }
 0x307   : > { %v1103_v16 = vpack.c.bf16 %v1095_v13, %v1093_v12 }
 0x308   : > { %v1104_v17 = vpack.c.bf16 %v1096_v15, %v1094_v14  ;;  %v1137_v25 = vld [vmem:[#allocation3 + $0x20] sm:$0xff] (!%p1585_p4)  ;;  %1204 = vperm.xlu1 (!%p1585_p4), %1762, %v1150_v39   ;;  %1199 = vperm.xlu0 (!%p1585_p4), %1761, %v1149_v40  }
 0x309   : > { %1111 = vst [vmem:[#allocation3 + $0x30] sm:$0xff] %v1103_v16  ;;  %v1138_v22 = vld [vmem:[#allocation3 + $0x28] sm:$0xff] (!%p1585_p4) }
 0x30a   : > { %1112 = vst [vmem:[#allocation3 + $0x38] sm:$0xff] %v1104_v17  ;;  %1305 = vmatprep.subr.bf16.mxu0 (!%p1585_p4), %v1138_v22  ;;  %1650 = vmatprep.subr.bf16.mxu1 (!%p1585_p4), %v1138_v22 }
 0x30b   : > { %1306 = vmatpush1.bf16.msra.mxu0 %v1137_v25  ;;  %1654 = vmatpush1.bf16.msra.mxu1 %v1137_v25 }
 0x30c   : > { %1214 = vperm.xlu1 %1762, %v1152_v43   ;;  %1209 = vperm.xlu0 %1761, %v1151_v44  }
 0x310   : > { %v1139_v28 = vld [vmem:[#allocation3 + $0x30] sm:$0xff]  ;;  %1224 = vperm.xlu1 %1762, %v1154_v45   ;;  %1219 = vperm.xlu0 %1761, %v1153_v46  }
 0x311   : > { %v1140_v26 = vld [vmem:[#allocation3 + $0x38] sm:$0xff] }
 0x312   : > { %1307 = vmatprep.subr.bf16.mxu0 %v1140_v26  ;;  %1651 = vmatprep.subr.bf16.mxu1 %v1140_v26 }
 0x313   : > { %1308 = vmatpush1.bf16.msra.mxu0 %v1139_v28  ;;  %1655 = vmatpush1.bf16.msra.mxu1 %v1139_v28 }
 0x314   : > { %1234 = vperm.xlu1 %1762, %v1156_v49   ;;  %1229 = vperm.xlu0 %1761, %v1155_v50  }
 0x316   : > { %1594 = vmatmul.mubr.msk.bf16.vlgmr.msra.gmra.mrb[0].mxu0 %vm642_vm1, %v1763_v30  ;;  %1598 = vmatmul.mubr.msk.bf16.vlgmr.msra.gmra.mrb[0].mxu1 %vm642_vm1, %v1764_v31 }
 0x317   : > { %1343 = vmatprep.mubr.bf16.mxu0 %v1846_v23  ;;  %1383 = vmatprep.mubr.bf16.mxu1 %v1846_v23 }
 0x31e   : > { %1595 = vmatmul.mubr.msk.bf16.gmra.mrb[4].mxu0 %vm642_vm1, %v1765_v36  ;;  %1599 = vmatmul.mubr.msk.bf16.gmra.mrb[4].mxu1 %vm642_vm1, %v1766_v37 }
 0x31f   : > { %1353 = vmatprep.mubr.bf16.mxu0 %v1846_v23  ;;  %1393 = vmatprep.mubr.bf16.mxu1 %v1846_v23 }
 0x326   : > { %1596 = vmatmul.mubr.msk.bf16.gmra.mrb[8].mxu0 %vm642_vm1, %v1767_v41  ;;  %1600 = vmatmul.mubr.msk.bf16.gmra.mrb[8].mxu1 %vm642_vm1, %v1768_v42 }
 0x327   : > { %1363 = vmatprep.mubr.bf16.mxu0 %v1846_v23  ;;  %1403 = vmatprep.mubr.bf16.mxu1 %v1846_v23 }
 0x32e   : > { %1597 = vmatmul.mubr.msk.bf16.gmra.mrb[12].mxu0 %vm642_vm1, %v1769_v47  ;;  %1601 = vmatmul.mubr.msk.bf16.gmra.mrb[12].mxu1 %vm642_vm1, %v1770_v48 }
 0x376   : > { %v1170_v51 = vpop.permute.xlu1 %1169 }
 0x377   : > { %v1160_v52 = vpop.permute.xlu0 %1159 }
 0x37b   : > { %v1175_v53 = vpop.permute.xlu1 %1174  ;;  %v1165_v54 = vpop.permute.xlu0 %1164 }
 0x37f   : > { %v2204_v55 = vpop.permute.xlu1 %1184  ;;  %v2206_v56 = vpop.permute.xlu0 %1179 }
 0x383   : > { %v2208_v57 = vpop.permute.xlu1 %1194  ;;  %v2210_v58 = vpop.permute.xlu0 %1189 }
 0x387   : > { %v1205_v59 = vpop.permute.xlu1 %1204  ;;  %v1200_v60 = vpop.permute.xlu0 %1199 }
 0x38b   : > { %v1215_v13 = vpop.permute.xlu1 %1214  ;;  %v1210_v14 = vpop.permute.xlu0 %1209 }
 0x38f   : > { %v1225_v32 = vpop.permute.xlu1 %1224  ;;  %v1220_v33 = vpop.permute.xlu0 %1219 }
 0x393   : > { %v1235_v49 = vpop.permute.xlu1 %1234  ;;  %v1230_v50 = vpop.permute.xlu0 %1229 }
 0x3e9   : > { %v1335_v61 = vpop.f32.mrb[0].mxu0  ;;  %v1375_v62 = vpop.f32.mrb[0].mxu1 }
 0x3ea   : > { %v1336_v63 = vadd.f32 %v1335_v61, %v1160_v52  ;;  %v1376_v0 = vadd.f32 %v1375_v62, %v1200_v60  ;;  %v1337_v1 = vpop.f32.mrb[1].mxu0  ;;  %v1377_v2 = vpop.f32.mrb[1].mxu1 }
 0x3eb   : > { %v1338_v3 = vadd.f32 %v1337_v1, %v1160_v52  ;;  %v1378_v4 = vadd.f32 %v1377_v2, %v1200_v60  ;;  %v1339_v5 = vpop.f32.mrb[2].mxu0  ;;  %v1379_v6 = vpop.f32.mrb[2].mxu1 }
 0x3ec   : > { %1414 = vst [vmem:[#allocation7] sm:$0xff] %v1336_v63  ;;  %1430 = vst [vmem:[#allocation7 + $0x80] sm:$0xff] %v1376_v0  ;;  %v1340_v7 = vadd.f32 %v1339_v5, %v1165_v54  ;;  %v1380_v8 = vadd.f32 %v1379_v6, %v1205_v59  ;;  %v1341_v9 = vpop.f32.mrb[3].mxu0  ;;  %v1381_v10 = vpop.f32.mrb[3].mxu1 }
 0x3ed   : > { %1415 = vst [vmem:[#allocation7 + $0x8] sm:$0xff] %v1338_v3  ;;  %1431 = vst [vmem:[#allocation7 + $0x88] sm:$0xff] %v1378_v4  ;;  %v1342_v11 = vadd.f32 %v1341_v9, %v1165_v54  ;;  %v1382_v12 = vadd.f32 %v1381_v10, %v1205_v59 }
 0x3ee   : > { %1416 = vst [vmem:[#allocation7 + $0x10] sm:$0xff] %v1340_v7  ;;  %1432 = vst [vmem:[#allocation7 + $0x90] sm:$0xff] %v1380_v8 }
 0x3ef   : > { %1417 = vst [vmem:[#allocation7 + $0x18] sm:$0xff] %v1342_v11  ;;  %1433 = vst [vmem:[#allocation7 + $0x98] sm:$0xff] %v1382_v12 }
 0x3f1   : > { %v1345_v15 = vpop.f32.mrb[4].mxu0  ;;  %v1385_v16 = vpop.f32.mrb[4].mxu1 }
 0x3f2   : > { %v1346_v17 = vadd.f32 %v1345_v15, %v1170_v51  ;;  %v1386_v18 = vadd.f32 %v1385_v16, %v1210_v14  ;;  %v1347_v19 = vpop.f32.mrb[5].mxu0  ;;  %v1387_v20 = vpop.f32.mrb[5].mxu1 }
 0x3f3   : > { %v1348_v21 = vadd.f32 %v1347_v19, %v1170_v51  ;;  %v1388_v22 = vadd.f32 %v1387_v20, %v1210_v14  ;;  %v1349_v23 = vpop.f32.mrb[6].mxu0  ;;  %v1389_v25 = vpop.f32.mrb[6].mxu1 }
 0x3f4   : > { %1418 = vst [vmem:[#allocation7 + $0x20] sm:$0xff] %v1346_v17  ;;  %1434 = vst [vmem:[#allocation7 + $0xa0] sm:$0xff] %v1386_v18  ;;  %v1350_v26 = vadd.f32 %v1349_v23, %v1175_v53  ;;  %v1390_v27 = vadd.f32 %v1389_v25, %v1215_v13  ;;  %v1351_v28 = vpop.f32.mrb[7].mxu0  ;;  %v1391_v29 = vpop.f32.mrb[7].mxu1 }
 0x3f5   : > { %1419 = vst [vmem:[#allocation7 + $0x28] sm:$0xff] %v1348_v21  ;;  %1435 = vst [vmem:[#allocation7 + $0xa8] sm:$0xff] %v1388_v22  ;;  %v1352_v30 = vadd.f32 %v1351_v28, %v1175_v53  ;;  %v1392_v31 = vadd.f32 %v1391_v29, %v1215_v13 }
 0x3f6   : > { %1420 = vst [vmem:[#allocation7 + $0x30] sm:$0xff] %v1350_v26  ;;  %1436 = vst [vmem:[#allocation7 + $0xb0] sm:$0xff] %v1390_v27 }
 0x3f7   : > { %1421 = vst [vmem:[#allocation7 + $0x38] sm:$0xff] %v1352_v30  ;;  %1437 = vst [vmem:[#allocation7 + $0xb8] sm:$0xff] %v1392_v31 }
 0x3f9   : > { %v1355_v34 = vpop.f32.mrb[8].mxu0  ;;  %v1395_v35 = vpop.f32.mrb[8].mxu1 }
 0x3fa   : > { %v1356_v36 = vadd.f32 %v1355_v34, %v2206_v56  ;;  %v1396_v37 = vadd.f32 %v1395_v35, %v1220_v33  ;;  %v1357_v24 = vpop.f32.mrb[9].mxu0  ;;  %v1397_v38 = vpop.f32.mrb[9].mxu1 }
 0x3fb   : > { %v1358_v39 = vadd.f32 %v1357_v24, %v2206_v56  ;;  %v1398_v40 = vadd.f32 %v1397_v38, %v1220_v33  ;;  %v1359_v41 = vpop.f32.mrb[10].mxu0  ;;  %v1399_v42 = vpop.f32.mrb[10].mxu1 }
 0x3fc   : > { %1422 = vst [vmem:[#allocation7 + $0x40] sm:$0xff] %v1356_v36  ;;  %1438 = vst [vmem:[#allocation7 + $0xc0] sm:$0xff] %v1396_v37  ;;  %v1360_v43 = vadd.f32 %v1359_v41, %v2204_v55  ;;  %v1400_v44 = vadd.f32 %v1399_v42, %v1225_v32  ;;  %v1361_v45 = vpop.f32.mrb[11].mxu0  ;;  %v1401_v46 = vpop.f32.mrb[11].mxu1 }
 0x3fd   : > { %1423 = vst [vmem:[#allocation7 + $0x48] sm:$0xff] %v1358_v39  ;;  %1439 = vst [vmem:[#allocation7 + $0xc8] sm:$0xff] %v1398_v40  ;;  %v1362_v47 = vadd.f32 %v1361_v45, %v2204_v55  ;;  %v1402_v48 = vadd.f32 %v1401_v46, %v1225_v32 }
 0x3fe   : > { %1424 = vst [vmem:[#allocation7 + $0x50] sm:$0xff] %v1360_v43  ;;  %1440 = vst [vmem:[#allocation7 + $0xd0] sm:$0xff] %v1400_v44 }
 0x3ff   : > { %1425 = vst [vmem:[#allocation7 + $0x58] sm:$0xff] %v1362_v47  ;;  %1441 = vst [vmem:[#allocation7 + $0xd8] sm:$0xff] %v1402_v48 }
 0x401   : > { %v1365_v51 = vpop.f32.mrb[12].mxu0  ;;  %v1405_v52 = vpop.f32.mrb[12].mxu1 }
 0x402   : > { %v1366_v53 = vadd.f32 %v1365_v51, %v2210_v58  ;;  %v1406_v54 = vadd.f32 %v1405_v52, %v1230_v50  ;;  %v1367_v56 = vpop.f32.mrb[13].mxu0  ;;  %v1407_v59 = vpop.f32.mrb[13].mxu1 }
 0x403   : > { %v1368_v60 = vadd.f32 %v1367_v56, %v2210_v58  ;;  %v1408_v61 = vadd.f32 %v1407_v59, %v1230_v50  ;;  %v1369_v62 = vpop.f32.mrb[14].mxu0  ;;  %v1409_v63 = vpop.f32.mrb[14].mxu1 }
 0x404   : > { %1426 = vst [vmem:[#allocation7 + $0x60] sm:$0xff] %v1366_v53  ;;  %1442 = vst [vmem:[#allocation7 + $0xe0] sm:$0xff] %v1406_v54  ;;  %v1370_v55 = vadd.f32 %v1369_v62, %v2208_v57  ;;  %v1410_v0 = vadd.f32 %v1409_v63, %v1235_v49  ;;  %v1371_v1 = vpop.f32.mrb[15].mxu0  ;;  %v1411_v2 = vpop.f32.mrb[15].mxu1 }
 0x405   : > { %1427 = vst [vmem:[#allocation7 + $0x68] sm:$0xff] %v1368_v60  ;;  %1443 = vst [vmem:[#allocation7 + $0xe8] sm:$0xff] %v1408_v61  ;;  %v1372_v3 = vadd.f32 %v1371_v1, %v2208_v57  ;;  %v1412_v4 = vadd.f32 %v1411_v2, %v1235_v49 }
 0x406   : > { %1428 = vst [vmem:[#allocation7 + $0x70] sm:$0xff] %v1370_v55  ;;  %1444 = vst [vmem:[#allocation7 + $0xf0] sm:$0xff] %v1410_v0 }
 0x407   : > { %1429 = vst [vmem:[#allocation7 + $0x78] sm:$0xff] %v1372_v3  ;;  %1445 = vst [vmem:[#allocation7 + $0xf8] sm:$0xff] %v1412_v4 }
 0x408 PF: > { %p1670_p6 = scmp.eq.s32.totalorder %s1901_s28, 1  ;;  %s1847_s23 = smov [#allocation7]  }
 0x409   : > { %s1452_s24 = sshll.u32 %s1847_s23, 4  ;;  %s1453_s24 = int_to_ptr.vmem [resolvable:$true] %s1452_s24 }
 0x40a   : > { %s1799_s25 = scalar_lea.vmem %s1453_s24, 4096  ;;  %p1806_p13 = scmp.lt.s32.totalorder %s1453_s24, %s1453_s24 }
 0x40b   : > { %p1800_p10 = scmp.ne.s32.totalorder %s1453_s24, %s1799_s25  ;;  %p1807_p0 = scmp.lt.s32.totalorder %s1799_s25, %s1799_s25 }
 0x40d   : > { %p1801_p11 = pnand %p1800_p10, %p1670_p6  ;;  %p1808_p1 = por %p1807_p0, %p1806_p13 }
 0x40f   : > { %p1802_p12 = pneg %p1801_p11 }
 0x411   : > { %p1809_p5 = pnand %p1808_p1, %p1802_p12 }
 0x413   : > { %1812 = shalt.err (!%p1809_p5)
}
 0x414   : > { %s1813_s29 = scalar_lea.hbm %s2254_s8, 4096 }
 0x415   : > { %p1814_p7 = scmp.ne.s32.totalorder %s2254_s8, %s1813_s29  ;;  %p1819_p2 = scmp.lt.u32.totalorder %s1813_s29, %s2254_s8 }
 0x417   : > { %p1815_p9 = pnand %p1814_p7, %p1670_p6 }
 0x419   : > { %p1816_p8 = pneg %p1815_p9 }
 0x41b   : > { %p1821_p3 = pnand %p1819_p2, %p1816_p8 }
 0x41d   : > { %1824 = shalt.err (!%p1821_p3)
}
 0x41e   : > { %s1848_s14 = smov 256   ;;  %s1849_s15 = smov 16  }
 0x41f   : > { %1661 = dma.vmem_to_hbm [thread:$0]  (%p1670_p6), %s1453_s24, 4096, %s2254_s8, [#allocation6], %s1848_s14, %s1848_s14, %s1849_s15  }
 0x420   : > { %1834 = dma.done.wait (%p1670_p6), [#allocation6], 4096  }
 0x421   : > { %1836 = vsyncadd (%p1670_p6), [#allocation6], 4294963200 }
 0x422 PF: > { %s20_s27 = sadd.s32 1, %s1839_s27  }
 0x423   : > { %p17_p4 = scmp.ge.s32.totalorder %s20_s27, 4  }
 0x425   :  { %19 = sbr.rel (!%p17_p4) target bundleno = 2 (0x2), region = 95 }
 0x42c   :  { %1468 = vsyncpa [#allocation5], 1 }
 0x42d   :  { %1470 = vsyncpa [#allocation5 + $0x1], 1 }
 0x42e   :  { %1471 = vsyncpa [#allocation6], 1 }
 0x42f   :  { %1473 = vsyncpa [#allocation6 + $0x1], 1 }

// kernel: tpu_custom_call.1
= control target key start
LH: loop header
LB: loop body
LE: loop exit
PB: predicated region body
PF: predicated region fallthrough
CT: control target
= control target key end

     0   :  { %13 = vsyncpa [#allocation5], 0  ;;  %s2246_s0 = inlined_call_operand.vmem [shape: bf16[64,256], index: 0, kind: input, shape index: {}]   ;;  %s2247_s1 = inlined_call_operand.hbm [shape: bf16[64,64], index: 1, kind: input, shape index: {}]   ;;  %s2248_s2 = inlined_call_operand.vmem [shape: f32[64,1], index: 2, kind: input, shape index: {}]   ;;  %s2249_s3 = inlined_call_operand.vmem [shape: bf16[256,256], index: 3, kind: input, shape index: {}]   ;;  %s2250_s4 = inlined_call_operand.vmem [shape: bf16[2,64,64], index: 4, kind: input, shape index: {}]   ;;  %s2251_s5 = inlined_call_operand.vmem [shape: f32[2,64,1], index: 5, kind: input, shape index: {}]   ;;  %s2252_s6 = inlined_call_operand.vmem [shape: bf16[128,64], index: 6, kind: input, shape index: {}]   ;;  %s2253_s7 = inlined_call_operand.vmem [shape: f32[128,1], index: 7, kind: input, shape index: {}]   ;;  %s2254_s8 = inlined_call_operand.hbm [shape: f32[128,256], index: 8, kind: output, shape index: {}]  }
   0x1   :  { %14 = vsyncpa [#allocation6], 0  ;;  %s1895_s27 = smov 0  }
   0x2 LB: > { %s1901_s28 = sadd.s32 4294967295, %s1839_s27   ;;  %p1519_p0 = scmp.ge.s32.totalorder %s1839_s27, 1  ;;  %s1839_s27 = sphi %s1895_s27, %s20_s27  }
   0x3   : > { %p224_p1 = scmp.lt.s32.totalorder %s1839_s27, 3  ;;  %s1841_s29 = smov [#allocation4]  }
   0x4   : > { %s239_s30 = sshll.u32 %s1841_s29, 4  ;;  %p2255_p4 = scmp.eq.s32.totalorder %s1901_s28, 0  ;;  %s240_s30 = int_to_ptr.vmem [resolvable:$true] %s239_s30 }
   0x5   : > { %p1906_p3 = pnand %p1519_p0, %p224_p1  ;;  %s1771_s13 = scalar_lea.hbm %s2247_s1, 512 }
   0x6   : > { %p1772_p7 = scmp.ne.s32.totalorder %s2247_s1, %s1771_s13  ;;  %p1778_p11 = scmp.lt.u32.totalorder %s1771_s13, %s2247_s1 }
   0x7   : > { %s2257_s9 = scalar_select %p1906_p3, 1, 0 }
   0x8   : > { %p1664_p5 = pneg %p1906_p3 }
   0xa   : > { %p1915_p6 = pnand %p2255_p4, %p1664_p5 }
   0xc   : > { %p1773_p8 = pneg %p1915_p6 }
   0xe   : > { %p1774_p9 = pnand %p1773_p8, %p1772_p7 }
  0x10   : > { %p1775_p10 = pneg %p1774_p9 }
  0x12   : > { %p1780_p12 = pnand %p1778_p11, %p1775_p10 }
  0x14   : > { %1783 = shalt.err (!%p1780_p12)
}
  0x15   : > { %s1784_s18 = scalar_lea.vmem %s240_s30, 512  ;;  %p1792_p5 = scmp.lt.s32.totalorder %s240_s30, %s240_s30 }
  0x16   : > { %p1785_p13 = scmp.ne.s32.totalorder %s240_s30, %s1784_s18  ;;  %p1793_p2 = scmp.lt.s32.totalorder %s1784_s18, %s1784_s18 }
  0x18   : > { %p1787_p0 = pnand %p1785_p13, %p1773_p8  ;;  %p1794_p4 = por %p1793_p2, %p1792_p5 }
  0x1a   : > { %p1788_p1 = pneg %p1787_p0 }
  0x1c   : > { %p1795_p3 = pnand %p1794_p4, %p1788_p1 }
  0x1e   : > { %1798 = shalt.err (!%p1795_p3)
}
  0x1f   : > { %s1842_s19 = smov 64   ;;  %s1843_s20 = smov 4  }
  0x20   : > { %1667 = dma.hbm_to_vmem [thread:$0]  (!%p1915_p6), %s2247_s1, 512, %s240_s30, [#allocation5], %s1842_s19, %s1842_s19, %s1843_s20  }
  0x21   : > { %p2259_p7 = scmp.ne.s32.totalorder %s2257_s9, 0 }
  0x22   : > { %p2260_p9 = scmp.eq.s32.totalorder (!%p2259_p7), %s1901_s28, 0 }
  0x23   : > { %283 = sbr.rel (%p2259_p7) target bundleno = 1058 (0x422), region = 52 }
  0x2a   : > { %1830 = dma.done.wait (%p2260_p9), [#allocation5], 512   ;;  %p2261_p8 = pmov %p2260_p9 }
  0x2b   : > { %p317_p2 = scmp.lt.s32.totalorder %s1901_s28, 1  ;;  %p2262_p3 = scmp.ne.s32.totalorder %s1901_s28, 0 }
  0x2c   : > { %1832 = vsyncadd (%p2261_p8), [#allocation5], 4294966784  ;;  %v1691_v0 = vld [vmem:[%s2246_s0 + $0x4] ss:$8 sps:$4 sm:$0xff] (!%p2262_p3)   ;;  %v1693_v1 = vld [vmem:[%s2246_s0] ss:$8 sps:$4 sm:$0xff] (!%p2262_p3)  }
  0x2d   : > { %s318_s23 = scalar_select %p317_p2, %s1901_s28, 1 }
  0x2e   : > { %331 = sbr.rel (%p2262_p3) target bundleno = 295 (0x127), region = 60  ;;  %v1844_v2 = vmov (!%p2262_p3), 0   ;;  %469 = vmatprep.subr.bf16.mxu0 (!%p2262_p3), %v1691_v0  ;;  %1608 = vmatprep.subr.bf16.mxu1 (!%p2262_p3), %v1691_v0  ;;  %v1694_v3 = vld [vmem:[%s2246_s0 + $0x14] ss:$8 sps:$4 sm:$0xff] (!%p2262_p3)   ;;  %v1696_v4 = vld [vmem:[%s2246_s0 + $0x10] ss:$8 sps:$4 sm:$0xff] (!%p2262_p3)  }
  0x2f   : > { %s1606_s24 = sshll.u32 %s318_s23, 5  ;;  %s1607_s25 = sshll.u32 %s318_s23, 6  ;;  %501 = vmatprep.mubr.bf16.mxu0 (!%p2262_p3), %v1844_v2  ;;  %521 = vmatprep.mubr.bf16.mxu1 (!%p2262_p3), %v1844_v2  ;;  %v1697_v5 = vld [vmem:[%s2246_s0 + $0x24] ss:$8 sps:$4 sm:$0xff] (!%p2262_p3)   ;;  %v1699_v6 = vld [vmem:[%s2246_s0 + $0x20] ss:$8 sps:$4 sm:$0xff] (!%p2262_p3)  }
  0x30   : > { %s1946_s10 = scalar_lea.vmem %s2250_s4, %s1606_s24  ;;  %s1951_s11 = scalar_lea.vmem %s2251_s5, %s1607_s25  ;;  %470 = vmatpush1.bf16.msra.mxu0 (!%p2262_p3), %v1693_v1  ;;  %1612 = vmatpush1.bf16.msra.mxu1 (!%p2262_p3), %v1693_v1  ;;  %v1700_v7 = vld [vmem:[%s2246_s0 + $0x34] ss:$8 sps:$4 sm:$0xff] (!%p2262_p3)   ;;  %v348_v9 = vld [vmem:[%s2248_s2] sm:$0xff] (!%p2262_p3)  ;;  %v1702_v10 = vld [vmem:[%s2246_s0 + $0x30] ss:$8 sps:$4 sm:$0xff] (!%p2262_p3)   ;;  %vm456_vm0 = vcmask (!%p2262_p3), 523264  }
  0x31   : > { %471 = vmatprep.subr.bf16.mxu0 (!%p2262_p3), %v1694_v3  ;;  %1609 = vmatprep.subr.bf16.mxu1 (!%p2262_p3), %v1694_v3  ;;  %v350_v8 = vld [vmem:[%s2248_s2 + $0x10] sm:$0xff] (!%p2262_p3)  ;;  %v351_v11 = vld [vmem:[%s2248_s2 + $0x18] sm:$0xff] (!%p2262_p3)  ;;  %v349_v12 = vld [vmem:[%s2248_s2 + $0x8] sm:$0xff] (!%p2262_p3) }
  0x32   : > { %1690 = vset.pattern.permute.xlu1 (!%p2262_p3), %v1844_v2  ;;  %1689 = vset.pattern.permute.xlu0 (!%p2262_p3), %v1844_v2  ;;  %v1703_v13 = vld [vmem:[#allocation4] sm:$0xff] (!%p2262_p3)   ;;  %v1704_v14 = vld [vmem:[#allocation4 + $0x10] sm:$0xff] (!%p2262_p3)   ;;  %v353_v15 = vld [vmem:[%s2248_s2 + $0x28] sm:$0xff] (!%p2262_p3) }
  0x33   : > { %368 = vperm.xlu1 (!%p2262_p3), %1690, %v350_v8   ;;  %358 = vperm.xlu0 (!%p2262_p3), %1689, %v348_v9   ;;  %v352_v16 = vld [vmem:[%s2248_s2 + $0x20] sm:$0xff] (!%p2262_p3)  ;;  %v355_v17 = vld [vmem:[%s2248_s2 + $0x38] sm:$0xff] (!%p2262_p3)  ;;  %v354_v18 = vld [vmem:[%s2248_s2 + $0x30] sm:$0xff] (!%p2262_p3) }
  0x34   : > { %472 = vmatpush1.bf16.msra.mxu0 (!%p2262_p3), %v1696_v4  ;;  %1613 = vmatpush1.bf16.msra.mxu1 (!%p2262_p3), %v1696_v4  ;;  %v1705_v19 = vld [vmem:[#allocation4 + $0x8] sm:$0xff] (!%p2262_p3)   ;;  %v1706_v20 = vld [vmem:[#allocation4 + $0x18] sm:$0xff] (!%p2262_p3)  }
  0x35   : > { %473 = vmatprep.subr.bf16.mxu0 %v1697_v5  ;;  %1610 = vmatprep.subr.bf16.mxu1 %v1697_v5 }
  0x37   : > { %373 = vperm.xlu1 %1690, %v351_v11   ;;  %363 = vperm.xlu0 %1689, %v349_v12  }
  0x38   : > { %474 = vmatpush1.bf16.msra.mxu0 %v1699_v6  ;;  %1614 = vmatpush1.bf16.msra.mxu1 %v1699_v6 }
  0x39   : > { %475 = vmatprep.subr.bf16.mxu0 %v1700_v7  ;;  %1611 = vmatprep.subr.bf16.mxu1 %v1700_v7 }
  0x3b   : > { %383 = vperm.xlu1 %1690, %v353_v15   ;;  %378 = vperm.xlu0 %1689, %v352_v16  }
  0x3c   : > { %476 = vmatpush1.bf16.msra.mxu0 %v1702_v10  ;;  %1615 = vmatpush1.bf16.msra.mxu1 %v1702_v10 }
  0x3f   : > { %1541 = vmatmul.mubr.msk.bf16.vlgmr.msra.gmra.mrb[0].mxu0 %vm456_vm0, %v1703_v13  ;;  %1543 = vmatmul.mubr.msk.bf16.vlgmr.msra.gmra.mrb[0].mxu1 %vm456_vm0, %v1704_v14 }
  0x40   : > { %511 = vmatprep.mubr.bf16.mxu0 %v1844_v2  ;;  %531 = vmatprep.mubr.bf16.mxu1 %v1844_v2 }
  0x41   : > { %393 = vperm.xlu1 %1690, %v355_v17   ;;  %388 = vperm.xlu0 %1689, %v354_v18  }
  0x47   : > { %1542 = vmatmul.mubr.msk.bf16.gmra.mrb[4].mxu0 %vm456_vm0, %v1705_v19  ;;  %1544 = vmatmul.mubr.msk.bf16.gmra.mrb[4].mxu1 %vm456_vm0, %v1706_v20 }
  0xb2   : > { %v359_v21 = vpop.permute.xlu0 %358  ;;  %v369_v22 = vpop.permute.xlu1 %368 }
  0xb6   : > { %v364_v23 = vpop.permute.xlu0 %363  ;;  %v2007_v24 = vpop.permute.xlu1 %373 }
  0xba   : > { %v379_v25 = vpop.permute.xlu0 %378  ;;  %v384_v38 = vpop.permute.xlu1 %383 }
  0xc0   : > { %v389_v55 = vpop.permute.xlu0 %388  ;;  %v394_v12 = vpop.permute.xlu1 %393 }
 0x112   : > { %v503_v26 = vpop.f32.mrb[0].mxu0  ;;  %v523_v27 = vpop.f32.mrb[0].mxu1 }
 0x113   : > { %v504_v28 = vadd.f32 %v503_v26, %v359_v21  ;;  %v524_v29 = vadd.f32 %v523_v27, %v379_v25  ;;  %v505_v30 = vpop.f32.mrb[1].mxu0  ;;  %v525_v31 = vpop.f32.mrb[1].mxu1 }
 0x114   : > { %v506_v32 = vadd.f32 %v505_v30, %v359_v21  ;;  %v526_v33 = vadd.f32 %v525_v31, %v379_v25  ;;  %v507_v34 = vpop.f32.mrb[2].mxu0  ;;  %v527_v35 = vpop.f32.mrb[2].mxu1 }
 0x115   : > { %v542_v36 = vmul.f32 0.1, %v504_v28  ;;  %v550_v37 = vmul.f32 0.1, %v524_v29  ;;  %v574_v41 = vmax.f32 %v504_v28, 0.0  ;;  %v582_v42 = vmax.f32 %v524_v29, 0.0 }
 0x116   : > { %v543_v39 = vmul.f32 0.1, %v506_v32  ;;  %v551_v40 = vmul.f32 0.1, %v526_v33  ;;  %v508_v43 = vadd.f32 %v507_v34, %v364_v23  ;;  %v528_v44 = vadd.f32 %v527_v35, %v384_v38  ;;  %v509_v45 = vpop.f32.mrb[3].mxu0  ;;  %v529_v46 = vpop.f32.mrb[3].mxu1 }
 0x117   : > { %558 = vst [vmem:[#allocation2] sm:$0xff] %v542_v36  ;;  %566 = vst [vmem:[#allocation2 + $0x40] sm:$0xff] %v550_v37  ;;  %v575_v47 = vmax.f32 %v506_v32, 0.0  ;;  %v583_v48 = vmax.f32 %v526_v33, 0.0  ;;  %v510_v49 = vadd.f32 %v509_v45, %v364_v23  ;;  %v530_v50 = vadd.f32 %v529_v46, %v384_v38 }
 0x118   : > { %559 = vst [vmem:[#allocation2 + $0x8] sm:$0xff] %v543_v39  ;;  %567 = vst [vmem:[#allocation2 + $0x48] sm:$0xff] %v551_v40  ;;  %v544_v51 = vmul.f32 0.1, %v508_v43  ;;  %v576_v52 = vmax.f32 %v508_v43, 0.0  ;;  %v584_v54 = vmax.f32 %v528_v44, 0.0 }
 0x119   : > { %v552_v53 = vmul.f32 0.1, %v528_v44  ;;  %v545_v56 = vmul.f32 0.1, %v510_v49  ;;  %v577_v57 = vmax.f32 %v510_v49, 0.0  ;;  %v585_v59 = vmax.f32 %v530_v50, 0.0 }
 0x11a   : > { %v553_v58 = vmul.f32 0.1, %v530_v50  ;;  %560 = vst [vmem:[#allocation2 + $0x10] sm:$0xff] %v544_v51  ;;  %v590_v60 = vpack.c.bf16 %v576_v52, %v574_v41  ;;  %v594_v61 = vpack.c.bf16 %v584_v54, %v582_v42  ;;  %v513_v62 = vpop.f32.mrb[4].mxu0  ;;  %v533_v63 = vpop.f32.mrb[4].mxu1 }
 0x11b   : > { %568 = vst [vmem:[#allocation2 + $0x50] sm:$0xff] %v552_v53  ;;  %561 = vst [vmem:[#allocation2 + $0x18] sm:$0xff] %v545_v56  ;;  %v591_v0 = vpack.c.bf16 %v577_v57, %v575_v47  ;;  %v595_v1 = vpack.c.bf16 %v585_v59, %v583_v48  ;;  %v514_v2 = vadd.f32 %v513_v62, %v369_v22  ;;  %v515_v4 = vpop.f32.mrb[5].mxu0  ;;  %v535_v5 = vpop.f32.mrb[5].mxu1 }
 0x11c   : > { %569 = vst [vmem:[#allocation2 + $0x58] sm:$0xff] %v553_v58  ;;  %v534_v3 = vadd.f32 %v533_v63, %v389_v55  ;;  %598 = vst [vmem:[#allocation3] sm:$0xff] %v590_v60  ;;  %v516_v6 = vadd.f32 %v515_v4, %v369_v22  ;;  %v536_v7 = vadd.f32 %v535_v5, %v389_v55  ;;  %v517_v8 = vpop.f32.mrb[6].mxu0  ;;  %v537_v9 = vpop.f32.mrb[6].mxu1 }
 0x11d   : > { %602 = vst [vmem:[#allocation3 + $0x20] sm:$0xff] %v594_v61  ;;  %599 = vst [vmem:[#allocation3 + $0x8] sm:$0xff] %v591_v0  ;;  %v546_v10 = vmul.f32 0.1, %v514_v2  ;;  %v578_v15 = vmax.f32 %v514_v2, 0.0  ;;  %v518_v17 = vadd.f32 %v517_v8, %v2007_v24  ;;  %v538_v18 = vadd.f32 %v537_v9, %v394_v12  ;;  %v519_v19 = vpop.f32.mrb[7].mxu0 }
 0x11e   : > { %603 = vst [vmem:[#allocation3 + $0x28] sm:$0xff] %v595_v1  ;;  %v554_v11 = vmul.f32 0.1, %v534_v3  ;;  %v547_v13 = vmul.f32 0.1, %v516_v6  ;;  %v586_v16 = vmax.f32 %v534_v3, 0.0  ;;  %v520_v23 = vadd.f32 %v519_v19, %v2007_v24 }
 0x11f   : > { %v555_v14 = vmul.f32 0.1, %v536_v7  ;;  %562 = vst [vmem:[#allocation2 + $0x20] sm:$0xff] %v546_v10  ;;  %v539_v20 = vpop.f32.mrb[7].mxu1  ;;  %v579_v21 = vmax.f32 %v516_v6, 0.0  ;;  %v587_v22 = vmax.f32 %v536_v7, 0.0 }
 0x120   : > { %570 = vst [vmem:[#allocation2 + $0x60] sm:$0xff] %v554_v11  ;;  %563 = vst [vmem:[#allocation2 + $0x28] sm:$0xff] %v547_v13  ;;  %v540_v25 = vadd.f32 %v539_v20, %v394_v12  ;;  %v548_v26 = vmul.f32 0.1, %v518_v17  ;;  %v580_v27 = vmax.f32 %v518_v17, 0.0  ;;  %v588_v29 = vmax.f32 %v538_v18, 0.0 }
 0x121   : > { %571 = vst [vmem:[#allocation2 + $0x68] sm:$0xff] %v555_v14  ;;  %v556_v28 = vmul.f32 0.1, %v538_v18  ;;  %v549_v30 = vmul.f32 0.1, %v520_v23  ;;  %v581_v31 = vmax.f32 %v520_v23, 0.0 }
 0x122   : > { %v557_v32 = vmul.f32 0.1, %v540_v25  ;;  %v589_v33 = vmax.f32 %v540_v25, 0.0  ;;  %564 = vst [vmem:[#allocation2 + $0x30] sm:$0xff] %v548_v26  ;;  %v592_v34 = vpack.c.bf16 %v580_v27, %v578_v15  ;;  %v596_v35 = vpack.c.bf16 %v588_v29, %v586_v16 }
 0x123   : > { %572 = vst [vmem:[#allocation2 + $0x70] sm:$0xff] %v556_v28  ;;  %565 = vst [vmem:[#allocation2 + $0x38] sm:$0xff] %v549_v30  ;;  %v593_v36 = vpack.c.bf16 %v581_v31, %v579_v21 }
 0x124   : > { %573 = vst [vmem:[#allocation2 + $0x78] sm:$0xff] %v557_v32  ;;  %v597_v37 = vpack.c.bf16 %v589_v33, %v587_v22  ;;  %600 = vst [vmem:[#allocation3 + $0x10] sm:$0xff] %v592_v34 }
 0x125   : > { %604 = vst [vmem:[#allocation3 + $0x30] sm:$0xff] %v596_v35  ;;  %601 = vst [vmem:[#allocation3 + $0x18] sm:$0xff] %v593_v36 }
 0x126   : > { %605 = vst [vmem:[#allocation3 + $0x38] sm:$0xff] %v597_v37 }
 0x127 PF: > { %v615_v24 = vld [vmem:[#allocation3 + $0x8] sm:$0xff]  ;;  %v614_v38 = vld [vmem:[#allocation3] sm:$0xff]  ;;  %v1845_v40 = vmov 0   ;;  %v1718_v47 = vld [vmem:[%s2249_s3 + $0x14] ss:$8 sps:$4 sm:$0xff]   ;;  %vm642_vm1 = vcmask 523264  }
 0x128   : > { %655 = vmatprep.subr.bf16.mxu0 %v615_v24  ;;  %687 = vmatprep.mubr.bf16.mxu0 %v1845_v40  ;;  %v619_v42 = vld [vmem:[#allocation3 + $0x28] sm:$0xff]  ;;  %v618_v43 = vld [vmem:[#allocation3 + $0x20] sm:$0xff]  ;;  %v1716_v50 = vld [vmem:[%s2249_s3 + $0x10] ss:$8 sps:$4 sm:$0xff]   ;;  %p1585_p4 = scmp.ne.s32.totalorder %s1901_s28, 1 }
 0x129   : > { %656 = vmatpush1.bf16.msra.mxu0 %v614_v38  ;;  %1707 = vset.pattern.permute.xlu0 %v1845_v40  ;;  %v1715_v45 = vld [vmem:[%s2249_s3 + $0x4] ss:$8 sps:$4 sm:$0xff]   ;;  %v1713_v46 = vld [vmem:[%s2249_s3] ss:$8 sps:$4 sm:$0xff]   ;;  %v1724_v53 = vld [vmem:[%s2249_s3 + $0x34] ss:$8 sps:$4 sm:$0xff]  }
 0x12a   : > { %1708 = vset.pattern.permute.xlu1 %v1845_v40  ;;  %1616 = vmatprep.subr.bf16.mxu1 %v1715_v45  ;;  %v1709_v49 = vld [vmem:[%s1946_s10] sm:$0xff]   ;;  %v1710_v54 = vld [vmem:[%s1946_s10 + $0x8] sm:$0xff]   ;;  %v1722_v55 = vld [vmem:[%s2249_s3 + $0x30] ss:$8 sps:$4 sm:$0xff]  }
 0x12b   : > { %v616_v41 = vld [vmem:[#allocation3 + $0x10] sm:$0xff]  ;;  %1632 = vmatpush1.bf16.msra.mxu1 %v1713_v46  ;;  %v1721_v51 = vld [vmem:[%s2249_s3 + $0x24] ss:$8 sps:$4 sm:$0xff]   ;;  %v1719_v52 = vld [vmem:[%s2249_s3 + $0x20] ss:$8 sps:$4 sm:$0xff]  }
 0x12c   : > { %v617_v39 = vld [vmem:[#allocation3 + $0x18] sm:$0xff]  ;;  %v620_v48 = vld [vmem:[#allocation3 + $0x30] sm:$0xff]  ;;  %1617 = vmatprep.subr.bf16.mxu1 %v1718_v47  ;;  %v1727_v56 = vld [vmem:[%s2249_s3 + $0x44] ss:$8 sps:$4 sm:$0xff]  }
 0x12d   : > { %657 = vmatprep.subr.bf16.mxu0 %v617_v39  ;;  %v621_v44 = vld [vmem:[#allocation3 + $0x38] sm:$0xff]  ;;  %v1725_v57 = vld [vmem:[%s2249_s3 + $0x40] ss:$8 sps:$4 sm:$0xff]   ;;  %v1711_v59 = vld [vmem:[%s1946_s10 + $0x10] sm:$0xff]  }
 0x12e   : > { %658 = vmatpush1.bf16.msra.mxu0 %v616_v41  ;;  %v1730_v58 = vld [vmem:[%s2249_s3 + $0x54] ss:$8 sps:$4 sm:$0xff]   ;;  %v1728_v60 = vld [vmem:[%s2249_s3 + $0x50] ss:$8 sps:$4 sm:$0xff]   ;;  %v1733_v61 = vld [vmem:[%s2249_s3 + $0x64] ss:$8 sps:$4 sm:$0xff]  }
 0x12f   : > { %659 = vmatprep.subr.bf16.mxu0 %v619_v42  ;;  %1633 = vmatpush1.bf16.msra.mxu1 %v1716_v50  ;;  %v1731_v62 = vld [vmem:[%s2249_s3 + $0x60] ss:$8 sps:$4 sm:$0xff]   ;;  %v1736_v63 = vld [vmem:[%s2249_s3 + $0x74] ss:$8 sps:$4 sm:$0xff]   ;;  %v1734_v1 = vld [vmem:[%s2249_s3 + $0x70] ss:$8 sps:$4 sm:$0xff]  }
 0x130   : > { %1618 = vmatprep.subr.bf16.mxu1 %v1721_v51  ;;  %v1712_v0 = vld [vmem:[%s1946_s10 + $0x18] sm:$0xff]   ;;  %v1739_v2 = vld [vmem:[%s2249_s3 + $0x84] ss:$8 sps:$4 sm:$0xff]   ;;  %v1737_v3 = vld [vmem:[%s2249_s3 + $0x80] ss:$8 sps:$4 sm:$0xff]  }
 0x131   : > { %v1742_v4 = vld [vmem:[%s2249_s3 + $0x94] ss:$8 sps:$4 sm:$0xff]   ;;  %v1740_v5 = vld [vmem:[%s2249_s3 + $0x90] ss:$8 sps:$4 sm:$0xff]   ;;  %v1745_v6 = vld [vmem:[%s2249_s3 + $0xa4] ss:$8 sps:$4 sm:$0xff]  }
 0x132   : > { %660 = vmatpush1.bf16.msra.mxu0 %v618_v43  ;;  %v1743_v7 = vld [vmem:[%s2249_s3 + $0xa0] ss:$8 sps:$4 sm:$0xff]   ;;  %v1748_v8 = vld [vmem:[%s2249_s3 + $0xb4] ss:$8 sps:$4 sm:$0xff]   ;;  %v1746_v9 = vld [vmem:[%s2249_s3 + $0xb0] ss:$8 sps:$4 sm:$0xff]  }
 0x133   : > { %661 = vmatprep.subr.bf16.mxu0 %v621_v44  ;;  %1634 = vmatpush1.bf16.msra.mxu1 %v1719_v52  ;;  %v1751_v10 = vld [vmem:[%s2249_s3 + $0xc4] ss:$8 sps:$4 sm:$0xff]   ;;  %v1749_v11 = vld [vmem:[%s2249_s3 + $0xc0] ss:$8 sps:$4 sm:$0xff]   ;;  %v1754_v12 = vld [vmem:[%s2249_s3 + $0xd4] ss:$8 sps:$4 sm:$0xff]  }
 0x134   : > { %1619 = vmatprep.subr.bf16.mxu1 %v1724_v53  ;;  %v1752_v13 = vld [vmem:[%s2249_s3 + $0xd0] ss:$8 sps:$4 sm:$0xff]   ;;  %v1757_v14 = vld [vmem:[%s2249_s3 + $0xe4] ss:$8 sps:$4 sm:$0xff]   ;;  %v1755_v15 = vld [vmem:[%s2249_s3 + $0xe0] ss:$8 sps:$4 sm:$0xff]  }
 0x135   : > { %v1760_v16 = vld [vmem:[%s2249_s3 + $0xf4] ss:$8 sps:$4 sm:$0xff]   ;;  %v1758_v17 = vld [vmem:[%s2249_s3 + $0xf0] ss:$8 sps:$4 sm:$0xff]   ;;  %v1017_v18 = vld [vmem:[%s1951_s11] sm:$0xff] }
 0x136   : > { %662 = vmatpush1.bf16.msra.mxu0 %v620_v48  ;;  %v1019_v19 = vld [vmem:[%s1951_s11 + $0x10] sm:$0xff]  ;;  %1027 = vperm.xlu0 %1707, %v1017_v18   ;;  %v1018_v20 = vld [vmem:[%s1951_s11 + $0x8] sm:$0xff]  ;;  %v1020_v21 = vld [vmem:[%s1951_s11 + $0x18] sm:$0xff] }
 0x137   : > { %944 = vmatprep.subr.bf16.mxu0 %v1715_v45  ;;  %1635 = vmatpush1.bf16.msra.mxu1 %v1722_v55  ;;  %v1022_v22 = vld [vmem:[%s1951_s11 + $0x28] sm:$0xff]  ;;  %v1021_v23 = vld [vmem:[%s1951_s11 + $0x20] sm:$0xff]  ;;  %v1024_v25 = vld [vmem:[%s1951_s11 + $0x38] sm:$0xff] }
 0x138   : > { %1620 = vmatprep.subr.bf16.mxu1 %v1727_v56  ;;  %1037 = vperm.xlu1 %1708, %v1019_v19   ;;  %v1023_v26 = vld [vmem:[%s1951_s11 + $0x30] sm:$0xff] }
 0x139   : > { %1549 = vmatmul.mubr.msk.bf16.vlgmr.msra.gmra.mrb[0].mxu0 %vm642_vm1, %v1709_v49 }
 0x13a   : > { %697 = vmatprep.mubr.bf16.mxu0 %v1845_v40  ;;  %945 = vmatpush1.bf16.msra.mxu0 %v1713_v46 }
 0x13b   : > { %946 = vmatprep.subr.bf16.mxu0 %v1718_v47  ;;  %1636 = vmatpush1.bf16.msra.mxu1 %v1725_v57 }
 0x13c   : > { %1621 = vmatprep.subr.bf16.mxu1 %v1730_v58  ;;  %1032 = vperm.xlu0 %1707, %v1018_v20  }
 0x13d   : > { %1042 = vperm.xlu1 %1708, %v1020_v21  }
 0x13e   : > { %947 = vmatpush1.bf16.msra.mxu0 %v1716_v50 }
 0x13f   : > { %948 = vmatprep.subr.bf16.mxu0 %v1721_v51  ;;  %1637 = vmatpush1.bf16.msra.mxu1 %v1728_v60  ;;  %v768_v51 = vld [vmem:[#allocation2] sm:$0xff] }
 0x140   : > { %1622 = vmatprep.subr.bf16.mxu1 %v1733_v61  ;;  %1047 = vperm.xlu0 %1707, %v1021_v23  }
 0x141   : > { %1550 = vmatmul.mubr.msk.bf16.gmra.mrb[4].mxu0 %vm642_vm1, %v1710_v54  ;;  %1052 = vperm.xlu1 %1708, %v1022_v22   ;;  %v770_v54 = vld [vmem:[#allocation2 + $0x10] sm:$0xff] }
 0x142   : > { %707 = vmatprep.mubr.bf16.mxu0 %v1845_v40  ;;  %949 = vmatpush1.bf16.msra.mxu0 %v1719_v52  ;;  %v769_v52 = vld [vmem:[#allocation2 + $0x8] sm:$0xff] }
 0x143   : > { %950 = vmatprep.subr.bf16.mxu0 %v1724_v53  ;;  %1638 = vmatpush1.bf16.msra.mxu1 %v1731_v62 }
 0x144   : > { %1623 = vmatprep.subr.bf16.mxu1 %v1736_v63  ;;  %1057 = vperm.xlu0 %1707, %v1023_v26  }
 0x145   : > { %1062 = vperm.xlu1 %1708, %v1024_v25  }
 0x146   : > { %951 = vmatpush1.bf16.msra.mxu0 %v1722_v55 }
 0x147   : > { %952 = vmatprep.subr.bf16.mxu0 %v1727_v56  ;;  %1639 = vmatpush1.bf16.msra.mxu1 %v1734_v1 }
 0x148   : > { %1624 = vmatprep.subr.bf16.mxu1 %v1739_v2 }
 0x149   : > { %1551 = vmatmul.mubr.msk.bf16.gmra.mrb[8].mxu0 %vm642_vm1, %v1711_v59 }
 0x14a   : > { %717 = vmatprep.mubr.bf16.mxu0 %v1845_v40  ;;  %953 = vmatpush1.bf16.msra.mxu0 %v1725_v57  ;;  %v771_v57 = vld [vmem:[#allocation2 + $0x18] sm:$0xff] }
 0x14b   : > { %954 = vmatprep.subr.bf16.mxu0 %v1730_v58  ;;  %1640 = vmatpush1.bf16.msra.mxu1 %v1737_v3 }
 0x14c   : > { %1625 = vmatprep.subr.bf16.mxu1 %v1742_v4 }
 0x14e   : > { %955 = vmatpush1.bf16.msra.mxu0 %v1728_v60 }
 0x14f   : > { %956 = vmatprep.subr.bf16.mxu0 %v1733_v61  ;;  %1641 = vmatpush1.bf16.msra.mxu1 %v1740_v5 }
 0x150   : > { %1626 = vmatprep.subr.bf16.mxu1 %v1745_v6 }
 0x151   : > { %1552 = vmatmul.mubr.msk.bf16.gmra.mrb[12].mxu0 %vm642_vm1, %v1712_v0 }
 0x152   : > { %957 = vmatpush1.bf16.msra.mxu0 %v1731_v62 }
 0x153   : > { %958 = vmatprep.subr.bf16.mxu0 %v1736_v63  ;;  %1642 = vmatpush1.bf16.msra.mxu1 %v1743_v7 }
 0x154   : > { %1627 = vmatprep.subr.bf16.mxu1 %v1748_v8 }
 0x156   : > { %959 = vmatpush1.bf16.msra.mxu0 %v1734_v1 }
 0x157   : > { %960 = vmatprep.subr.bf16.mxu0 %v1739_v2  ;;  %1643 = vmatpush1.bf16.msra.mxu1 %v1746_v9 }
 0x158   : > { %1628 = vmatprep.subr.bf16.mxu1 %v1751_v10 }
 0x15a   : > { %961 = vmatpush1.bf16.msra.mxu0 %v1737_v3 }
 0x15b   : > { %962 = vmatprep.subr.bf16.mxu0 %v1742_v4  ;;  %1644 = vmatpush1.bf16.msra.mxu1 %v1749_v11 }
 0x15c   : > { %1629 = vmatprep.subr.bf16.mxu1 %v1754_v12 }
 0x15e   : > { %963 = vmatpush1.bf16.msra.mxu0 %v1740_v5  ;;  %v772_v5 = vld [vmem:[#allocation2 + $0x20] sm:$0xff] }
 0x15f   : > { %964 = vmatprep.subr.bf16.mxu0 %v1745_v6  ;;  %1645 = vmatpush1.bf16.msra.mxu1 %v1752_v13 }
 0x160   : > { %1630 = vmatprep.subr.bf16.mxu1 %v1757_v14 }
 0x162   : > { %965 = vmatpush1.bf16.msra.mxu0 %v1743_v7 }
 0x163   : > { %966 = vmatprep.subr.bf16.mxu0 %v1748_v8  ;;  %1646 = vmatpush1.bf16.msra.mxu1 %v1755_v15  ;;  %v773_v8 = vld [vmem:[#allocation2 + $0x28] sm:$0xff] }
 0x164   : > { %1631 = vmatprep.subr.bf16.mxu1 %v1760_v16 }
 0x166   : > { %967 = vmatpush1.bf16.msra.mxu0 %v1746_v9 }
 0x167   : > { %968 = vmatprep.subr.bf16.mxu0 %v1751_v10  ;;  %1647 = vmatpush1.bf16.msra.mxu1 %v1758_v17 }
 0x16a   : > { %969 = vmatpush1.bf16.msra.mxu0 %v1749_v11 }
 0x16b   : > { %970 = vmatprep.subr.bf16.mxu0 %v1754_v12  ;;  %v774_v12 = vld [vmem:[#allocation2 + $0x30] sm:$0xff] }
 0x16e   : > { %971 = vmatpush1.bf16.msra.mxu0 %v1752_v13 }
 0x16f   : > { %972 = vmatprep.subr.bf16.mxu0 %v1757_v14 }
 0x172   : > { %973 = vmatpush1.bf16.msra.mxu0 %v1755_v15 }
 0x173   : > { %974 = vmatprep.subr.bf16.mxu0 %v1760_v16  ;;  %v775_v16 = vld [vmem:[#allocation2 + $0x38] sm:$0xff] }
 0x176   : > { %975 = vmatpush1.bf16.msra.mxu0 %v1758_v17 }
 0x1b5   : > { %v1028_v50 = vpop.permute.xlu0 %1027 }
 0x1b7   : > { %v1038_v4 = vpop.permute.xlu1 %1037 }
 0x1bb   : > { %v1033_v60 = vpop.permute.xlu0 %1032 }
 0x1bc   : > { %v1043_v23 = vpop.permute.xlu1 %1042 }
 0x20c   : > { %v689_v27 = vpop.f32.mrb[0].mxu0 }
 0x20d   : > { %v691_v28 = vpop.f32.mrb[1].mxu0 }
 0x20e   : > { %v693_v29 = vpop.f32.mrb[2].mxu0 }
 0x20f   : > { %v728_v30 = vpack.c.bf16 %v693_v29, %v689_v27  ;;  %v695_v31 = vpop.f32.mrb[3].mxu0  ;;  %v776_v29 = vld [vmem:[#allocation2 + $0x40] sm:$0xff] }
 0x210   : > { %v729_v32 = vpack.c.bf16 %v695_v31, %v691_v28 }
 0x212   : > { %976 = vmatprep.mubr.bf16.mxu0 %v729_v32  ;;  %v777_v32 = vld [vmem:[#allocation2 + $0x48] sm:$0xff] }
 0x213   : > { %977 = vmatmul.mubr.bf16.vlgmr.msra.gmra.mrb[16].mxu0 %v728_v30 }
 0x214   : > { %v699_v33 = vpop.f32.mrb[4].mxu0 }
 0x215   : > { %v701_v34 = vpop.f32.mrb[5].mxu0 }
 0x216   : > { %v703_v35 = vpop.f32.mrb[6].mxu0 }
 0x217   : > { %v730_v36 = vpack.c.bf16 %v703_v35, %v699_v33  ;;  %v705_v37 = vpop.f32.mrb[7].mxu0 }
 0x218   : > { %v731_v24 = vpack.c.bf16 %v705_v37, %v701_v34 }
 0x21a   : > { %986 = vmatprep.mubr.bf16.mxu1 %v731_v24 }
 0x21b   : > { %987 = vmatmul.mubr.bf16.vlgmr.msra.gmra.mrb[0].mxu1 %v730_v36  ;;  %v778_v36 = vld [vmem:[#allocation2 + $0x50] sm:$0xff] }
 0x21c   : > { %v709_v38 = vpop.f32.mrb[8].mxu0 }
 0x21d   : > { %v711_v39 = vpop.f32.mrb[9].mxu0 }
 0x21e   : > { %v713_v40 = vpop.f32.mrb[10].mxu0 }
 0x21f   : > { %v732_v41 = vpack.c.bf16 %v713_v40, %v709_v38  ;;  %v715_v42 = vpop.f32.mrb[11].mxu0 }
 0x220   : > { %v733_v43 = vpack.c.bf16 %v715_v42, %v711_v39  ;;  %v779_v39 = vld [vmem:[#allocation2 + $0x58] sm:$0xff] }
 0x222   : > { %996 = vmatprep.mubr.bf16.mxu1 %v733_v43 }
 0x223   : > { %997 = vmatmul.mubr.bf16.gmra.mrb[4].mxu1 %v732_v41  ;;  %v1048_v41 = vpop.permute.xlu0 %1047 }
 0x224   : > { %v719_v44 = vpop.f32.mrb[12].mxu0 }
 0x225   : > { %v721_v45 = vpop.f32.mrb[13].mxu0 }
 0x226   : > { %v723_v46 = vpop.f32.mrb[14].mxu0 }
 0x227   : > { %v734_v47 = vpack.c.bf16 %v723_v46, %v719_v44  ;;  %v725_v48 = vpop.f32.mrb[15].mxu0 }
 0x228   : > { %v735_v49 = vpack.c.bf16 %v725_v48, %v721_v45 }
 0x22a   : > { %1006 = vmatprep.mubr.bf16.mxu1 %v735_v49 }
 0x22b   : > { %1007 = vmatmul.mubr.bf16.gmra.mrb[8].mxu1 %v734_v47  ;;  %v1053_v47 = vpop.permute.xlu1 %1052 }
 0x2e6   : > { %v978_v53 = vpop.f32.mrb[16].mxu0 }
 0x2e7   : > { %v979_v55 = vadd.f32 %v978_v53, %v768_v51  ;;  %v980_v56 = vpop.f32.mrb[17].mxu0 }
 0x2e8   : > { %v981_v58 = vadd.f32 %v980_v56, %v769_v52  ;;  %v982_v59 = vpop.f32.mrb[18].mxu0  ;;  %v780_v52 = vld [vmem:[#allocation2 + $0x60] sm:$0xff] }
 0x2e9   : > { %v1065_v61 = vadd.f32 %v1028_v50, %v979_v55  ;;  %v983_v62 = vadd.f32 %v982_v59, %v770_v54  ;;  %v984_v63 = vpop.f32.mrb[19].mxu0  ;;  %v781_v55 = vld [vmem:[#allocation2 + $0x68] sm:$0xff]  ;;  %v782_v59 = vld [vmem:[#allocation2 + $0x70] sm:$0xff] }
 0x2ea   : > { %v1066_v0 = vadd.f32 %v1028_v50, %v981_v58  ;;  %v985_v1 = vadd.f32 %v984_v63, %v771_v57  ;;  %v783_v63 = vld [vmem:[#allocation2 + $0x78] sm:$0xff] }
 0x2eb   : > { %v1067_v2 = vadd.f32 %v1033_v60, %v983_v62  ;;  %v1081_v6 = vmax.f32 %v1065_v61, 0.0 }
 0x2ec   : > { %v1068_v3 = vadd.f32 %v1033_v60, %v985_v1  ;;  %v1082_v9 = vmax.f32 %v1066_v0, 0.0  ;;  %v1058_v0 = vpop.permute.xlu0 %1057 }
 0x2ed   : > { %v1083_v7 = vmax.f32 %v1067_v2, 0.0 }
 0x2ee   : > { %v1084_v10 = vmax.f32 %v1068_v3, 0.0  ;;  %v988_v11 = vpop.f32.mrb[0].mxu1 }
 0x2ef   : > { %v1097_v13 = vpack.c.bf16 %v1083_v7, %v1081_v6  ;;  %v989_v14 = vadd.f32 %v988_v11, %v772_v5  ;;  %v990_v15 = vpop.f32.mrb[1].mxu1  ;;  %v1063_v7 = vpop.permute.xlu1 %1062 }
 0x2f0   : > { %v1098_v17 = vpack.c.bf16 %v1084_v10, %v1082_v9  ;;  %v991_v18 = vadd.f32 %v990_v15, %v773_v8  ;;  %v992_v19 = vpop.f32.mrb[2].mxu1 }
 0x2f1   : > { %1105 = vst [vmem:[#allocation3] sm:$0xff] %v1097_v13  ;;  %v1069_v20 = vadd.f32 %v1038_v4, %v989_v14  ;;  %v993_v21 = vadd.f32 %v992_v19, %v774_v12  ;;  %v994_v22 = vpop.f32.mrb[3].mxu1 }
 0x2f2   : > { %1106 = vst [vmem:[#allocation3 + $0x8] sm:$0xff] %v1098_v17  ;;  %v1070_v25 = vadd.f32 %v1038_v4, %v991_v18  ;;  %v995_v26 = vadd.f32 %v994_v22, %v775_v16 }
 0x2f3   : > { %v1071_v27 = vadd.f32 %v1043_v23, %v993_v21  ;;  %v1085_v30 = vmax.f32 %v1069_v20, 0.0 }
 0x2f4   : > { %v1072_v28 = vadd.f32 %v1043_v23, %v995_v26  ;;  %v1086_v33 = vmax.f32 %v1070_v25, 0.0  ;;  %v1846_v23 = vmov (!%p1585_p4), 0  }
 0x2f5   : > { %v1087_v31 = vmax.f32 %v1071_v27, 0.0  ;;  %1333 = vmatprep.mubr.bf16.mxu0 (!%p1585_p4), %v1846_v23  ;;  %1373 = vmatprep.mubr.bf16.mxu1 (!%p1585_p4), %v1846_v23  ;;  %v1143_v27 = vld [vmem:[%s2253_s7 + $0x10] sm:$0xff] (!%p1585_p4) }
 0x2f6   : > { %v1088_v34 = vmax.f32 %v1072_v28, 0.0  ;;  %v998_v35 = vpop.f32.mrb[4].mxu1  ;;  %1762 = vset.pattern.permute.xlu1 (!%p1585_p4), %v1846_v23  ;;  %1761 = vset.pattern.permute.xlu0 (!%p1585_p4), %v1846_v23 }
 0x2f7   : > { %v1099_v37 = vpack.c.bf16 %v1087_v31, %v1085_v30  ;;  %v999_v24 = vadd.f32 %v998_v35, %v776_v29  ;;  %v1000_v38 = vpop.f32.mrb[5].mxu1  ;;  %v1141_v29 = vld [vmem:[%s2253_s7] sm:$0xff] (!%p1585_p4)  ;;  %1169 = vperm.xlu1 (!%p1585_p4), %1762, %v1143_v27  }
 0x2f8   : > { %v1100_v40 = vpack.c.bf16 %v1088_v34, %v1086_v33  ;;  %v1001_v42 = vadd.f32 %v1000_v38, %v777_v32  ;;  %v1002_v43 = vpop.f32.mrb[6].mxu1  ;;  %v1133_v19 = vld [vmem:[#allocation3] sm:$0xff] (!%p1585_p4)  ;;  %1159 = vperm.xlu0 (!%p1585_p4), %1761, %v1141_v29   ;;  %v1144_v32 = vld [vmem:[%s2253_s7 + $0x18] sm:$0xff] (!%p1585_p4)  ;;  %v1142_v33 = vld [vmem:[%s2253_s7 + $0x8] sm:$0xff] (!%p1585_p4) }
 0x2f9   : > { %1107 = vst [vmem:[#allocation3 + $0x10] sm:$0xff] %v1099_v37  ;;  %v1073_v44 = vadd.f32 %v1048_v41, %v999_v24  ;;  %v1003_v45 = vadd.f32 %v1002_v43, %v778_v36  ;;  %v1004_v46 = vpop.f32.mrb[7].mxu1  ;;  %v1134_v18 = vld [vmem:[#allocation3 + $0x8] sm:$0xff] (!%p1585_p4)  ;;  %v1763_v30 = vld [vmem:[%s2252_s6] sm:$0xff] (!%p1585_p4)   ;;  %v1148_v24 = vld [vmem:[%s2253_s7 + $0x38] sm:$0xff] (!%p1585_p4) }
 0x2fa   : > { %1108 = vst [vmem:[#allocation3 + $0x18] sm:$0xff] %v1100_v40  ;;  %v1074_v48 = vadd.f32 %v1048_v41, %v1001_v42  ;;  %v1005_v49 = vadd.f32 %v1004_v46, %v779_v39  ;;  %1301 = vmatprep.subr.bf16.mxu0 (!%p1585_p4), %v1134_v18  ;;  %1648 = vmatprep.subr.bf16.mxu1 (!%p1585_p4), %v1134_v18  ;;  %v1764_v31 = vld [vmem:[%s2252_s6 + $0x20] sm:$0xff] (!%p1585_p4)   ;;  %v1146_v34 = vld [vmem:[%s2253_s7 + $0x28] sm:$0xff] (!%p1585_p4)  ;;  %v1147_v38 = vld [vmem:[%s2253_s7 + $0x30] sm:$0xff] (!%p1585_p4) }
 0x2fb   : > { %v1075_v50 = vadd.f32 %v1053_v47, %v1003_v45  ;;  %v1089_v53 = vmax.f32 %v1073_v44, 0.0  ;;  %1302 = vmatpush1.bf16.msra.mxu0 (!%p1585_p4), %v1133_v19  ;;  %1652 = vmatpush1.bf16.msra.mxu1 (!%p1585_p4), %v1133_v19  ;;  %v1145_v35 = vld [vmem:[%s2253_s7 + $0x20] sm:$0xff] (!%p1585_p4)  ;;  %v1765_v36 = vld [vmem:[%s2252_s6 + $0x8] sm:$0xff] (!%p1585_p4)   ;;  %v1767_v41 = vld [vmem:[%s2252_s6 + $0x10] sm:$0xff] (!%p1585_p4)  }
 0x2fc   : > { %v1076_v51 = vadd.f32 %v1053_v47, %v1005_v49  ;;  %v1090_v56 = vmax.f32 %v1074_v48, 0.0  ;;  %1174 = vperm.xlu1 (!%p1585_p4), %1762, %v1144_v32   ;;  %1164 = vperm.xlu0 (!%p1585_p4), %1761, %v1142_v33   ;;  %v1766_v37 = vld [vmem:[%s2252_s6 + $0x28] sm:$0xff] (!%p1585_p4)   ;;  %v1149_v40 = vld [vmem:[%s2253_s7 + $0x40] sm:$0xff] (!%p1585_p4)  ;;  %v1768_v42 = vld [vmem:[%s2252_s6 + $0x30] sm:$0xff] (!%p1585_p4)  }
 0x2fd   : > { %v1091_v54 = vmax.f32 %v1075_v50, 0.0  ;;  %v1150_v39 = vld [vmem:[%s2253_s7 + $0x48] sm:$0xff] (!%p1585_p4)  ;;  %v1152_v43 = vld [vmem:[%s2253_s7 + $0x58] sm:$0xff] (!%p1585_p4)  ;;  %v1151_v44 = vld [vmem:[%s2253_s7 + $0x50] sm:$0xff] (!%p1585_p4) }
 0x2fe   : > { %v1092_v57 = vmax.f32 %v1076_v51, 0.0  ;;  %v1008_v58 = vpop.f32.mrb[8].mxu1  ;;  %v1154_v45 = vld [vmem:[%s2253_s7 + $0x68] sm:$0xff] (!%p1585_p4)  ;;  %v1153_v46 = vld [vmem:[%s2253_s7 + $0x60] sm:$0xff] (!%p1585_p4)  ;;  %v1769_v47 = vld [vmem:[%s2252_s6 + $0x18] sm:$0xff] (!%p1585_p4)  }
 0x2ff   : > { %v1101_v60 = vpack.c.bf16 %v1091_v54, %v1089_v53  ;;  %v1009_v61 = vadd.f32 %v1008_v58, %v780_v52  ;;  %v1010_v62 = vpop.f32.mrb[9].mxu1  ;;  %v1770_v48 = vld [vmem:[%s2252_s6 + $0x38] sm:$0xff] (!%p1585_p4)   ;;  %v1155_v50 = vld [vmem:[%s2253_s7 + $0x70] sm:$0xff] (!%p1585_p4) }
 0x300   : > { %v1102_v1 = vpack.c.bf16 %v1092_v57, %v1090_v56  ;;  %v1011_v2 = vadd.f32 %v1010_v62, %v781_v55  ;;  %v1012_v3 = vpop.f32.mrb[10].mxu1  ;;  %v1135_v21 = vld [vmem:[#allocation3 + $0x10] sm:$0xff] (!%p1585_p4)  ;;  %1184 = vperm.xlu1 (!%p1585_p4), %1762, %v1146_v34   ;;  %1179 = vperm.xlu0 (!%p1585_p4), %1761, %v1145_v35   ;;  %v1156_v49 = vld [vmem:[%s2253_s7 + $0x78] sm:$0xff] (!%p1585_p4) }
 0x301   : > { %1109 = vst [vmem:[#allocation3 + $0x20] sm:$0xff] %v1101_v60  ;;  %v1077_v4 = vadd.f32 %v1058_v0, %v1009_v61  ;;  %v1013_v5 = vadd.f32 %v1012_v3, %v782_v59  ;;  %v1014_v6 = vpop.f32.mrb[11].mxu1  ;;  %v1136_v20 = vld [vmem:[#allocation3 + $0x18] sm:$0xff] (!%p1585_p4) }
 0x302   : > { %1110 = vst [vmem:[#allocation3 + $0x28] sm:$0xff] %v1102_v1  ;;  %v1078_v8 = vadd.f32 %v1058_v0, %v1011_v2  ;;  %v1015_v9 = vadd.f32 %v1014_v6, %v783_v63  ;;  %1303 = vmatprep.subr.bf16.mxu0 (!%p1585_p4), %v1136_v20  ;;  %1649 = vmatprep.subr.bf16.mxu1 (!%p1585_p4), %v1136_v20 }
 0x303   : > { %v1079_v10 = vadd.f32 %v1063_v7, %v1013_v5  ;;  %v1093_v12 = vmax.f32 %v1077_v4, 0.0  ;;  %1304 = vmatpush1.bf16.msra.mxu0 (!%p1585_p4), %v1135_v21  ;;  %1653 = vmatpush1.bf16.msra.mxu1 (!%p1585_p4), %v1135_v21 }
 0x304   : > { %v1080_v11 = vadd.f32 %v1063_v7, %v1015_v9  ;;  %v1094_v14 = vmax.f32 %v1078_v8, 0.0  ;;  %1116 = sbr.rel (%p1585_p4) target bundleno = 1032 (0x408), region = 64  ;;  %1194 = vperm.xlu1 (!%p1585_p4), %1762, %v1148_v24   ;;  %1189 = vperm.xlu0 (!%p1585_p4), %1761, %v1147_v38  }
 0x305   : > { %v1095_v13 = vmax.f32 %v1079_v10, 0.0 }
 0x306   : > { %v1096_v15 = vmax.f32 %v1080_v11, 0.0 }
 0x307   : > { %v1103_v16 = vpack.c.bf16 %v1095_v13, %v1093_v12 }
 0x308   : > { %v1104_v17 = vpack.c.bf16 %v1096_v15, %v1094_v14  ;;  %v1137_v25 = vld [vmem:[#allocation3 + $0x20] sm:$0xff] (!%p1585_p4)  ;;  %1204 = vperm.xlu1 (!%p1585_p4), %1762, %v1150_v39   ;;  %1199 = vperm.xlu0 (!%p1585_p4), %1761, %v1149_v40  }
 0x309   : > { %1111 = vst [vmem:[#allocation3 + $0x30] sm:$0xff] %v1103_v16  ;;  %v1138_v22 = vld [vmem:[#allocation3 + $0x28] sm:$0xff] (!%p1585_p4) }
 0x30a   : > { %1112 = vst [vmem:[#allocation3 + $0x38] sm:$0xff] %v1104_v17  ;;  %1305 = vmatprep.subr.bf16.mxu0 (!%p1585_p4), %v1138_v22  ;;  %1650 = vmatprep.subr.bf16.mxu1 (!%p1585_p4), %v1138_v22 }
 0x30b   : > { %1306 = vmatpush1.bf16.msra.mxu0 %v1137_v25  ;;  %1654 = vmatpush1.bf16.msra.mxu1 %v1137_v25 }
 0x30c   : > { %1214 = vperm.xlu1 %1762, %v1152_v43   ;;  %1209 = vperm.xlu0 %1761, %v1151_v44  }
 0x310   : > { %v1139_v28 = vld [vmem:[#allocation3 + $0x30] sm:$0xff]  ;;  %1224 = vperm.xlu1 %1762, %v1154_v45   ;;  %1219 = vperm.xlu0 %1761, %v1153_v46  }
 0x311   : > { %v1140_v26 = vld [vmem:[#allocation3 + $0x38] sm:$0xff] }
 0x312   : > { %1307 = vmatprep.subr.bf16.mxu0 %v1140_v26  ;;  %1651 = vmatprep.subr.bf16.mxu1 %v1140_v26 }
 0x313   : > { %1308 = vmatpush1.bf16.msra.mxu0 %v1139_v28  ;;  %1655 = vmatpush1.bf16.msra.mxu1 %v1139_v28 }
 0x314   : > { %1234 = vperm.xlu1 %1762, %v1156_v49   ;;  %1229 = vperm.xlu0 %1761, %v1155_v50  }
 0x316   : > { %1594 = vmatmul.mubr.msk.bf16.vlgmr.msra.gmra.mrb[0].mxu0 %vm642_vm1, %v1763_v30  ;;  %1598 = vmatmul.mubr.msk.bf16.vlgmr.msra.gmra.mrb[0].mxu1 %vm642_vm1, %v1764_v31 }
 0x317   : > { %1343 = vmatprep.mubr.bf16.mxu0 %v1846_v23  ;;  %1383 = vmatprep.mubr.bf16.mxu1 %v1846_v23 }
 0x31e   : > { %1595 = vmatmul.mubr.msk.bf16.gmra.mrb[4].mxu0 %vm642_vm1, %v1765_v36  ;;  %1599 = vmatmul.mubr.msk.bf16.gmra.mrb[4].mxu1 %vm642_vm1, %v1766_v37 }
 0x31f   : > { %1353 = vmatprep.mubr.bf16.mxu0 %v1846_v23  ;;  %1393 = vmatprep.mubr.bf16.mxu1 %v1846_v23 }
 0x326   : > { %1596 = vmatmul.mubr.msk.bf16.gmra.mrb[8].mxu0 %vm642_vm1, %v1767_v41  ;;  %1600 = vmatmul.mubr.msk.bf16.gmra.mrb[8].mxu1 %vm642_vm1, %v1768_v42 }
 0x327   : > { %1363 = vmatprep.mubr.bf16.mxu0 %v1846_v23  ;;  %1403 = vmatprep.mubr.bf16.mxu1 %v1846_v23 }
 0x32e   : > { %1597 = vmatmul.mubr.msk.bf16.gmra.mrb[12].mxu0 %vm642_vm1, %v1769_v47  ;;  %1601 = vmatmul.mubr.msk.bf16.gmra.mrb[12].mxu1 %vm642_vm1, %v1770_v48 }
 0x376   : > { %v1170_v51 = vpop.permute.xlu1 %1169 }
 0x377   : > { %v1160_v52 = vpop.permute.xlu0 %1159 }
 0x37b   : > { %v1175_v53 = vpop.permute.xlu1 %1174  ;;  %v1165_v54 = vpop.permute.xlu0 %1164 }
 0x37f   : > { %v2204_v55 = vpop.permute.xlu1 %1184  ;;  %v2206_v56 = vpop.permute.xlu0 %1179 }
 0x383   : > { %v2208_v57 = vpop.permute.xlu1 %1194  ;;  %v2210_v58 = vpop.permute.xlu0 %1189 }
 0x387   : > { %v1205_v59 = vpop.permute.xlu1 %1204  ;;  %v1200_v60 = vpop.permute.xlu0 %1199 }
 0x38b   : > { %v1215_v13 = vpop.permute.xlu1 %1214  ;;  %v1210_v14 = vpop.permute.xlu0 %1209 }
 0x38f   : > { %v1225_v32 = vpop.permute.xlu1 %1224  ;;  %v1220_v33 = vpop.permute.xlu0 %1219 }
 0x393   : > { %v1235_v49 = vpop.permute.xlu1 %1234  ;;  %v1230_v50 = vpop.permute.xlu0 %1229 }
 0x3e9   : > { %v1335_v61 = vpop.f32.mrb[0].mxu0  ;;  %v1375_v62 = vpop.f32.mrb[0].mxu1 }
 0x3ea   : > { %v1336_v63 = vadd.f32 %v1335_v61, %v1160_v52  ;;  %v1376_v0 = vadd.f32 %v1375_v62, %v1200_v60  ;;  %v1337_v1 = vpop.f32.mrb[1].mxu0  ;;  %v1377_v2 = vpop.f32.mrb[1].mxu1 }
 0x3eb   : > { %v1338_v3 = vadd.f32 %v1337_v1, %v1160_v52  ;;  %v1378_v4 = vadd.f32 %v1377_v2, %v1200_v60  ;;  %v1339_v5 = vpop.f32.mrb[2].mxu0  ;;  %v1379_v6 = vpop.f32.mrb[2].mxu1 }
 0x3ec   : > { %1414 = vst [vmem:[#allocation7] sm:$0xff] %v1336_v63  ;;  %1430 = vst [vmem:[#allocation7 + $0x80] sm:$0xff] %v1376_v0  ;;  %v1340_v7 = vadd.f32 %v1339_v5, %v1165_v54  ;;  %v1380_v8 = vadd.f32 %v1379_v6, %v1205_v59  ;;  %v1341_v9 = vpop.f32.mrb[3].mxu0  ;;  %v1381_v10 = vpop.f32.mrb[3].mxu1 }
 0x3ed   : > { %1415 = vst [vmem:[#allocation7 + $0x8] sm:$0xff] %v1338_v3  ;;  %1431 = vst [vmem:[#allocation7 + $0x88] sm:$0xff] %v1378_v4  ;;  %v1342_v11 = vadd.f32 %v1341_v9, %v1165_v54  ;;  %v1382_v12 = vadd.f32 %v1381_v10, %v1205_v59 }
 0x3ee   : > { %1416 = vst [vmem:[#allocation7 + $0x10] sm:$0xff] %v1340_v7  ;;  %1432 = vst [vmem:[#allocation7 + $0x90] sm:$0xff] %v1380_v8 }
 0x3ef   : > { %1417 = vst [vmem:[#allocation7 + $0x18] sm:$0xff] %v1342_v11  ;;  %1433 = vst [vmem:[#allocation7 + $0x98] sm:$0xff] %v1382_v12 }
 0x3f1   : > { %v1345_v15 = vpop.f32.mrb[4].mxu0  ;;  %v1385_v16 = vpop.f32.mrb[4].mxu1 }
 0x3f2   : > { %v1346_v17 = vadd.f32 %v1345_v15, %v1170_v51  ;;  %v1386_v18 = vadd.f32 %v1385_v16, %v1210_v14  ;;  %v1347_v19 = vpop.f32.mrb[5].mxu0  ;;  %v1387_v20 = vpop.f32.mrb[5].mxu1 }
 0x3f3   : > { %v1348_v21 = vadd.f32 %v1347_v19, %v1170_v51  ;;  %v1388_v22 = vadd.f32 %v1387_v20, %v1210_v14  ;;  %v1349_v23 = vpop.f32.mrb[6].mxu0  ;;  %v1389_v25 = vpop.f32.mrb[6].mxu1 }
 0x3f4   : > { %1418 = vst [vmem:[#allocation7 + $0x20] sm:$0xff] %v1346_v17  ;;  %1434 = vst [vmem:[#allocation7 + $0xa0] sm:$0xff] %v1386_v18  ;;  %v1350_v26 = vadd.f32 %v1349_v23, %v1175_v53  ;;  %v1390_v27 = vadd.f32 %v1389_v25, %v1215_v13  ;;  %v1351_v28 = vpop.f32.mrb[7].mxu0  ;;  %v1391_v29 = vpop.f32.mrb[7].mxu1 }
 0x3f5   : > { %1419 = vst [vmem:[#allocation7 + $0x28] sm:$0xff] %v1348_v21  ;;  %1435 = vst [vmem:[#allocation7 + $0xa8] sm:$0xff] %v1388_v22  ;;  %v1352_v30 = vadd.f32 %v1351_v28, %v1175_v53  ;;  %v1392_v31 = vadd.f32 %v1391_v29, %v1215_v13 }
 0x3f6   : > { %1420 = vst [vmem:[#allocation7 + $0x30] sm:$0xff] %v1350_v26  ;;  %1436 = vst [vmem:[#allocation7 + $0xb0] sm:$0xff] %v1390_v27 }
 0x3f7   : > { %1421 = vst [vmem:[#allocation7 + $0x38] sm:$0xff] %v1352_v30  ;;  %1437 = vst [vmem:[#allocation7 + $0xb8] sm:$0xff] %v1392_v31 }
 0x3f9   : > { %v1355_v34 = vpop.f32.mrb[8].mxu0  ;;  %v1395_v35 = vpop.f32.mrb[8].mxu1 }
 0x3fa   : > { %v1356_v36 = vadd.f32 %v1355_v34, %v2206_v56  ;;  %v1396_v37 = vadd.f32 %v1395_v35, %v1220_v33  ;;  %v1357_v24 = vpop.f32.mrb[9].mxu0  ;;  %v1397_v38 = vpop.f32.mrb[9].mxu1 }
 0x3fb   : > { %v1358_v39 = vadd.f32 %v1357_v24, %v2206_v56  ;;  %v1398_v40 = vadd.f32 %v1397_v38, %v1220_v33  ;;  %v1359_v41 = vpop.f32.mrb[10].mxu0  ;;  %v1399_v42 = vpop.f32.mrb[10].mxu1 }
 0x3fc   : > { %1422 = vst [vmem:[#allocation7 + $0x40] sm:$0xff] %v1356_v36  ;;  %1438 = vst [vmem:[#allocation7 + $0xc0] sm:$0xff] %v1396_v37  ;;  %v1360_v43 = vadd.f32 %v1359_v41, %v2204_v55  ;;  %v1400_v44 = vadd.f32 %v1399_v42, %v1225_v32  ;;  %v1361_v45 = vpop.f32.mrb[11].mxu0  ;;  %v1401_v46 = vpop.f32.mrb[11].mxu1 }
 0x3fd   : > { %1423 = vst [vmem:[#allocation7 + $0x48] sm:$0xff] %v1358_v39  ;;  %1439 = vst [vmem:[#allocation7 + $0xc8] sm:$0xff] %v1398_v40  ;;  %v1362_v47 = vadd.f32 %v1361_v45, %v2204_v55  ;;  %v1402_v48 = vadd.f32 %v1401_v46, %v1225_v32 }
 0x3fe   : > { %1424 = vst [vmem:[#allocation7 + $0x50] sm:$0xff] %v1360_v43  ;;  %1440 = vst [vmem:[#allocation7 + $0xd0] sm:$0xff] %v1400_v44 }
 0x3ff   : > { %1425 = vst [vmem:[#allocation7 + $0x58] sm:$0xff] %v1362_v47  ;;  %1441 = vst [vmem:[#allocation7 + $0xd8] sm:$0xff] %v1402_v48 }
 0x401   : > { %v1365_v51 = vpop.f32.mrb[12].mxu0  ;;  %v1405_v52 = vpop.f32.mrb[12].mxu1 }
 0x402   : > { %v1366_v53 = vadd.f32 %v1365_v51, %v2210_v58  ;;  %v1406_v54 = vadd.f32 %v1405_v52, %v1230_v50  ;;  %v1367_v56 = vpop.f32.mrb[13].mxu0  ;;  %v1407_v59 = vpop.f32.mrb[13].mxu1 }
 0x403   : > { %v1368_v60 = vadd.f32 %v1367_v56, %v2210_v58  ;;  %v1408_v61 = vadd.f32 %v1407_v59, %v1230_v50  ;;  %v1369_v62 = vpop.f32.mrb[14].mxu0  ;;  %v1409_v63 = vpop.f32.mrb[14].mxu1 }
 0x404   : > { %1426 = vst [vmem:[#allocation7 + $0x60] sm:$0xff] %v1366_v53  ;;  %1442 = vst [vmem:[#allocation7 + $0xe0] sm:$0xff] %v1406_v54  ;;  %v1370_v55 = vadd.f32 %v1369_v62, %v2208_v57  ;;  %v1410_v0 = vadd.f32 %v1409_v63, %v1235_v49  ;;  %v1371_v1 = vpop.f32.mrb[15].mxu0  ;;  %v1411_v2 = vpop.f32.mrb[15].mxu1 }
 0x405   : > { %1427 = vst [vmem:[#allocation7 + $0x68] sm:$0xff] %v1368_v60  ;;  %1443 = vst [vmem:[#allocation7 + $0xe8] sm:$0xff] %v1408_v61  ;;  %v1372_v3 = vadd.f32 %v1371_v1, %v2208_v57  ;;  %v1412_v4 = vadd.f32 %v1411_v2, %v1235_v49 }
 0x406   : > { %1428 = vst [vmem:[#allocation7 + $0x70] sm:$0xff] %v1370_v55  ;;  %1444 = vst [vmem:[#allocation7 + $0xf0] sm:$0xff] %v1410_v0 }
 0x407   : > { %1429 = vst [vmem:[#allocation7 + $0x78] sm:$0xff] %v1372_v3  ;;  %1445 = vst [vmem:[#allocation7 + $0xf8] sm:$0xff] %v1412_v4 }
 0x408 PF: > { %p1670_p6 = scmp.eq.s32.totalorder %s1901_s28, 1  ;;  %s1847_s23 = smov [#allocation7]  }
 0x409   : > { %s1452_s24 = sshll.u32 %s1847_s23, 4  ;;  %s1453_s24 = int_to_ptr.vmem [resolvable:$true] %s1452_s24 }
 0x40a   : > { %s1799_s25 = scalar_lea.vmem %s1453_s24, 4096  ;;  %p1806_p13 = scmp.lt.s32.totalorder %s1453_s24, %s1453_s24 }
 0x40b   : > { %p1800_p10 = scmp.ne.s32.totalorder %s1453_s24, %s1799_s25  ;;  %p1807_p0 = scmp.lt.s32.totalorder %s1799_s25, %s1799_s25 }
 0x40d   : > { %p1801_p11 = pnand %p1800_p10, %p1670_p6  ;;  %p1808_p1 = por %p1807_p0, %p1806_p13 }
 0x40f   : > { %p1802_p12 = pneg %p1801_p11 }
 0x411   : > { %p1809_p5 = pnand %p1808_p1, %p1802_p12 }
 0x413   : > { %1812 = shalt.err (!%p1809_p5)
}
 0x414   : > { %s1813_s29 = scalar_lea.hbm %s2254_s8, 4096 }
 0x415   : > { %p1814_p7 = scmp.ne.s32.totalorder %s2254_s8, %s1813_s29  ;;  %p1819_p2 = scmp.lt.u32.totalorder %s1813_s29, %s2254_s8 }
 0x417   : > { %p1815_p9 = pnand %p1814_p7, %p1670_p6 }
 0x419   : > { %p1816_p8 = pneg %p1815_p9 }
 0x41b   : > { %p1821_p3 = pnand %p1819_p2, %p1816_p8 }
 0x41d   : > { %1824 = shalt.err (!%p1821_p3)
}
 0x41e   : > { %s1848_s14 = smov 256   ;;  %s1849_s15 = smov 16  }
 0x41f   : > { %1661 = dma.vmem_to_hbm [thread:$0]  (%p1670_p6), %s1453_s24, 4096, %s2254_s8, [#allocation6], %s1848_s14, %s1848_s14, %s1849_s15  }
 0x420   : > { %1834 = dma.done.wait (%p1670_p6), [#allocation6], 4096  }
 0x421   : > { %1836 = vsyncadd (%p1670_p6), [#allocation6], 4294963200 }
 0x422 PF: > { %s20_s27 = sadd.s32 1, %s1839_s27  }
 0x423   : > { %p17_p4 = scmp.ge.s32.totalorder %s20_s27, 4  }
 0x425   :  { %19 = sbr.rel (!%p17_p4) target bundleno = 2 (0x2), region = 95 }
 0x42c   :  { %1468 = vsyncpa [#allocation5], 1 }
 0x42d   :  { %1470 = vsyncpa [#allocation5 + $0x1], 1 }
 0x42e   :  { %1471 = vsyncpa [#allocation6], 1 }
 0x42f   :  { %1473 = vsyncpa [#allocation6 + $0x1], 1 }

</bundles_post_ra>
